<compile_context>
chip_gen: v5e
topology: v5e:2x2
jax: 0.10.0
libtpu: 0.0.40
codegen_flags: <defaults>
</compile_context>

<pallas_src>
import functools

import jax
import jax.numpy as jnp
import numpy as np
from jax import lax
from jax.experimental import pallas as pl
from jax.experimental.pallas import tpu as pltpu


def up16_kernel(H, W, p_ref, w1_ref, b1_ref, w2_ref, b2_ref, o_ref,
                midpad, m2col):
    # p_ref  : (1, H*W, 9*Cin)    im2col patches of the zero-padded input
    # w1_ref : (9*Cin, Cmid)      conv 3x3 weight, im2col layout
    # b1_ref : (1, Cmid)
    # w2_ref : (9*Cmid, 4*Cout)   combined transposed-conv weight (4 phases)
    # b2_ref : (1, 4*Cout)
    # o_ref  : (1, H*W, 4*Cout)   all 4 parity phases, channel-blocked
    # midpad : (H+2, W+2, Cmid)   scratch: mid with a 1-pixel zero border
    # m2col  : (H*W, 9*Cmid)      scratch: im2col of mid (3x3 neighbourhood)
    HW = H * W
    Cmid = w1_ref.shape[1]

    # ---- Stage 1: Conv2d(3x3, pad=1) + ReLU — one MXU matmul ----
    mid = jnp.dot(p_ref[0], w1_ref[...], preferred_element_type=jnp.float32)
    mid = jnp.maximum(mid + b1_ref[...], 0.0)                  # (HW, Cmid)

    # ---- Spatialize mid with a zero border (border-only zeroing) ----
    zrow = jnp.zeros((1, W + 2, Cmid), jnp.float32)
    zcol = jnp.zeros((H, 1, Cmid), jnp.float32)
    midpad[0:1, :, :] = zrow
    midpad[H + 1:H + 2, :, :] = zrow
    midpad[1:H + 1, 0:1, :] = zcol
    midpad[1:H + 1, W + 1:W + 2, :] = zcol
    midpad[1:H + 1, 1:W + 1, :] = mid.reshape(H, W, Cmid)

    # ---- Stage 2: ConvTranspose2d(4x4, s=2, p=1) + ReLU ----
    # Build the (H*W, 9*Cmid) im2col buffer once in a dense scratch, then a
    # single matmul produces all 4 output-parity phases at once.
    for th in range(3):
        for tw in range(3):
            t = th * 3 + tw
            m2col[:, t * Cmid:(t + 1) * Cmid] = (
                midpad[th:th + H, tw:tw + W, :].reshape(HW, Cmid))

    y = jnp.dot(m2col[...], w2_ref[...], preferred_element_type=jnp.float32)
    y = jnp.maximum(y + b2_ref[...], 0.0)                      # (HW, 4*Cout)
    o_ref[...] = y.reshape(1, HW, y.shape[-1])


def up16_forward(x_nchw, w1_pt, b1, w2_pt, b2):
    """x_nchw: (B, Cin, H, W); weights in PyTorch layouts.

    w1_pt: (Cmid, Cin, 3, 3)    Conv2d weight
    w2_pt: (Cmid, Cout, 4, 4)   ConvTranspose2d weight
    Returns NCHW output of shape (B, Cout, 2H, 2W).
    """
    B, Cin, H, W = x_nchw.shape
    Cmid = w1_pt.shape[0]
    Cout = w2_pt.shape[1]
    HW = H * W

    # ---- plain-JAX preprocessing (one-time, in HBM) ----
    x = jnp.transpose(x_nchw, (0, 2, 3, 1)).astype(jnp.float32)   # NHWC
    xpad = jnp.pad(x, ((0, 0), (1, 1), (1, 1), (0, 0)))
    patches = jnp.concatenate(
        [xpad[:, th:th + H, tw:tw + W, :].reshape(B, HW, Cin)
         for th in range(3) for tw in range(3)], axis=-1)         # (B, HW, 9*Cin)

    w1col = jnp.transpose(w1_pt, (2, 3, 1, 0)).astype(jnp.float32)
    w1col = w1col.reshape(9 * Cin, Cmid)
    b1r = b1.reshape(1, Cmid).astype(jnp.float32)

    # Combined transposed-conv weight: tap (th, tw) of the 3x3 mid
    # neighbourhood (dh = th-1, dw = tw-1) contributes W2[kh, kw] to output
    # parity phase (p, q) iff kh = p+1-2*dh and kw = q+1-2*dw are in [0, 4).
    w2 = jnp.transpose(w2_pt, (2, 3, 0, 1)).astype(jnp.float32)   # (4,4,Cmid,Cout)
    wc2 = jnp.zeros((3, 3, Cmid, 4, Cout), jnp.float32)
    for th in range(3):
        for tw in range(3):
            for p in range(2):
                kh = p + 1 - 2 * (th - 1)
                if not 0 <= kh < 4:
                    continue
                for q in range(2):
                    kw = q + 1 - 2 * (tw - 1)
                    if not 0 <= kw < 4:
                        continue
                    wc2 = wc2.at[th, tw, :, 2 * p + q, :].set(w2[kh, kw])
    wc2 = wc2.reshape(9 * Cmid, 4 * Cout)
    b2c = jnp.tile(b2.astype(jnp.float32), 4).reshape(1, 4 * Cout)

    kernel = functools.partial(up16_kernel, H, W)
    y = pl.pallas_call(
        kernel,
        out_shape=jax.ShapeDtypeStruct((B, HW, 4 * Cout), jnp.float32),
        grid_spec=pltpu.PrefetchScalarGridSpec(
            num_scalar_prefetch=0,
            grid=(B,),
            in_specs=[
                pl.BlockSpec((1, HW, 9 * Cin), lambda b: (b, 0, 0)),
                pl.BlockSpec((9 * Cin, Cmid), lambda b: (0, 0)),
                pl.BlockSpec((1, Cmid), lambda b: (0, 0)),
                pl.BlockSpec((9 * Cmid, 4 * Cout), lambda b: (0, 0)),
                pl.BlockSpec((1, 4 * Cout), lambda b: (0, 0)),
            ],
            out_specs=pl.BlockSpec((1, HW, 4 * Cout), lambda b: (b, 0, 0)),
            scratch_shapes=[
                pltpu.VMEM((H + 2, W + 2, Cmid), jnp.float32),
                pltpu.VMEM((HW, 9 * Cmid), jnp.float32),
            ],
        ),
        compiler_params=pltpu.CompilerParams(
            dimension_semantics=("parallel",)),
    )(patches, w1col, b1r, wc2, b2c)

    # Depth-to-space: interleave the 4 parity phases back to (2H, 2W).
    y = y.reshape(B, H, W, 2, 2, Cout)
    y = jnp.transpose(y, (0, 1, 3, 2, 4, 5)).reshape(B, 2 * H, 2 * W, Cout)
    return jnp.transpose(y, (0, 3, 1, 2))                          # NCHW


def up16_reference(x_nchw, w1_pt, b1, w2_pt, b2):
    """Pure-JAX reference matching PyTorch Up_16 semantics."""
    x = jnp.transpose(x_nchw, (0, 2, 3, 1)).astype(jnp.float32)
    w1 = jnp.transpose(w1_pt, (2, 3, 1, 0)).astype(jnp.float32)
    mid = lax.conv_general_dilated(
        x, w1, window_strides=(1, 1), padding=((1, 1), (1, 1)),
        dimension_numbers=("NHWC", "HWIO", "NHWC")) + b1.reshape(1, 1, 1, -1)
    mid = jnp.maximum(mid, 0.0)
    # ConvTranspose2d(k=4, s=2, p=1) == conv with lhs_dilation=2,
    # padding (2, 2), spatially flipped kernel, in/out channels swapped.
    w2_flip = jnp.transpose(
        w2_pt[:, :, ::-1, ::-1], (2, 3, 0, 1)).astype(jnp.float32)
    out = lax.conv_general_dilated(
        mid, w2_flip, window_strides=(1, 1), padding=((2, 2), (2, 2)),
        lhs_dilation=(2, 2),
        dimension_numbers=("NHWC", "HWIO", "NHWC")) + b2.reshape(1, 1, 1, -1)
    out = jnp.maximum(out, 0.0)
    return jnp.transpose(out, (0, 3, 1, 2))


if __name__ == "__main__":
    key = jax.random.PRNGKey(0)
    B, Cin, Cmid, Cout, H, W = 2, 4, 8, 4, 16, 16
    k1, k2, k3, k4, k5 = jax.random.split(key, 5)

    x = jax.random.normal(k1, (B, Cin, H, W), dtype=jnp.float32)
    w1 = 0.1 * jax.random.normal(k2, (Cmid, Cin, 3, 3), dtype=jnp.float32)
    b1 = 0.1 * jax.random.normal(k3, (Cmid,), dtype=jnp.float32)
    w2 = 0.1 * jax.random.normal(k4, (Cmid, Cout, 4, 4), dtype=jnp.float32)
    b2 = 0.1 * jax.random.normal(k5, (Cout,), dtype=jnp.float32)

    out = up16_forward(x, w1, b1, w2, b2)
    out = jax.block_until_ready(out)
    assert out.shape == (B, Cout, 2 * H, 2 * W)

    ref = up16_reference(x, w1, b1, w2, b2)
    np.testing.assert_allclose(np.asarray(out), np.asarray(ref),
                               rtol=1e-2, atol=1e-3)
    print("KERNEL_OK")
</pallas_src>

<mosaic_0001>
module attributes {stable_mosaic.version = 11 : i64} {
  func.func @up16_kernel(%arg0: i32, %arg1: memref<1x256x36xf32, #tpu.memory_space<vmem>>, %arg2: memref<36x8xf32, #tpu.memory_space<vmem>>, %arg3: memref<1x8xf32, #tpu.memory_space<vmem>>, %arg4: memref<72x16xf32, #tpu.memory_space<vmem>>, %arg5: memref<1x16xf32, #tpu.memory_space<vmem>>, %arg6: memref<1x256x16xf32, #tpu.memory_space<vmem>>, %arg7: memref<18x18x8xf32, #tpu.memory_space<vmem>>, %arg8: memref<256x72xf32, #tpu.memory_space<vmem>>) attributes {dimension_semantics = [#tpu.dimension_semantics<parallel>], iteration_bounds = array<i64: 2>, scalar_prefetch = 0 : i64, scratch_operands = 2 : i64, tpu.core_type = #tpu.core_type<tc>, window_params = [{transform_indices = @transform_0, window_bounds = array<i64: 1, 256, 36>}, {pipeline_mode = #tpu.pipeline_mode<synchronous>, transform_indices = @transform_1, window_bounds = array<i64: 36, 8>}, {pipeline_mode = #tpu.pipeline_mode<synchronous>, transform_indices = @transform_2, window_bounds = array<i64: 1, 8>}, {pipeline_mode = #tpu.pipeline_mode<synchronous>, transform_indices = @transform_3, window_bounds = array<i64: 72, 16>}, {pipeline_mode = #tpu.pipeline_mode<synchronous>, transform_indices = @transform_4, window_bounds = array<i64: 1, 16>}, {transform_indices = @transform_5, window_bounds = array<i64: 1, 256, 16>}]} {
    %c0 = arith.constant 0 : index
    %c0_0 = arith.constant 0 : index
    %c0_1 = arith.constant 0 : index
    %0 = vector.load %arg1[%c0, %c0_0, %c0_1] : memref<1x256x36xf32, #tpu.memory_space<vmem>>, vector<1x256x36xf32>
    %1 = vector.shape_cast %0 : vector<1x256x36xf32> to vector<256x36xf32>
    %c0_2 = arith.constant 0 : index
    %c0_3 = arith.constant 0 : index
    %2 = vector.load %arg2[%c0_2, %c0_3] : memref<36x8xf32, #tpu.memory_space<vmem>>, vector<36x8xf32>
    %cst = arith.constant dense<0.000000e+00> : vector<256x8xf32>
    %3 = tpu.matmul %1, %2, %cst {dimension_numbers = #tpu.dot_dimension_numbers<[1], [0], [0], [1], [0, 0, 1, 1], [], []>} : vector<256x36xf32>, vector<36x8xf32>, vector<256x8xf32> -> vector<256x8xf32>
    %c0_4 = arith.constant 0 : index
    %c0_5 = arith.constant 0 : index
    %4 = vector.load %arg3[%c0_4, %c0_5] : memref<1x8xf32, #tpu.memory_space<vmem>>, vector<1x8xf32>
    %5 = vector.broadcast %4 : vector<1x8xf32> to vector<256x8xf32>
    %6 = arith.addf %3, %5 : vector<256x8xf32>
    %cst_6 = arith.constant 0.000000e+00 : f32
    %7 = vector.broadcast %cst_6 : f32 to vector<256x8xf32>
    %8 = arith.maximumf %6, %7 : vector<256x8xf32>
    %cst_7 = arith.constant 0.000000e+00 : f32
    %9 = vector.broadcast %cst_7 : f32 to vector<1x18x8xf32>
    %cst_8 = arith.constant 0.000000e+00 : f32
    %10 = vector.broadcast %cst_8 : f32 to vector<16x1x8xf32>
    %c0_9 = arith.constant 0 : index
    %c0_10 = arith.constant 0 : index
    %c0_11 = arith.constant 0 : index
    %11 = vector.load %arg7[%c0_9, %c0_10, %c0_11] : memref<18x18x8xf32, #tpu.memory_space<vmem>>, vector<1x18x8xf32>
    tpu.vector_store %arg7[%c0_9, %c0_10, %c0_11], %9 {strides = array<i32>} : memref<18x18x8xf32, #tpu.memory_space<vmem>>, vector<1x18x8xf32>,
    %c17 = arith.constant 17 : index
    %c0_12 = arith.constant 0 : index
    %c0_13 = arith.constant 0 : index
    %12 = vector.load %arg7[%c17, %c0_12, %c0_13] : memref<18x18x8xf32, #tpu.memory_space<vmem>>, vector<1x18x8xf32>
    tpu.vector_store %arg7[%c17, %c0_12, %c0_13], %9 {strides = array<i32>} : memref<18x18x8xf32, #tpu.memory_space<vmem>>, vector<1x18x8xf32>,
    %c1 = arith.constant 1 : index
    %c0_14 = arith.constant 0 : index
    %c0_15 = arith.constant 0 : index
    %13 = vector.load %arg7[%c1, %c0_14, %c0_15] : memref<18x18x8xf32, #tpu.memory_space<vmem>>, vector<16x1x8xf32>
    tpu.vector_store %arg7[%c1, %c0_14, %c0_15], %10 {strides = array<i32>} : memref<18x18x8xf32, #tpu.memory_space<vmem>>, vector<16x1x8xf32>,
    %c1_16 = arith.constant 1 : index
    %c17_17 = arith.constant 17 : index
    %c0_18 = arith.constant 0 : index
    %14 = vector.load %arg7[%c1_16, %c17_17, %c0_18] : memref<18x18x8xf32, #tpu.memory_space<vmem>>, vector<16x1x8xf32>
    tpu.vector_store %arg7[%c1_16, %c17_17, %c0_18], %10 {strides = array<i32>} : memref<18x18x8xf32, #tpu.memory_space<vmem>>, vector<16x1x8xf32>,
    %15 = vector.shape_cast %8 : vector<256x8xf32> to vector<16x16x8xf32>
    %c1_19 = arith.constant 1 : index
    %c1_20 = arith.constant 1 : index
    %c0_21 = arith.constant 0 : index
    %16 = vector.load %arg7[%c1_19, %c1_20, %c0_21] : memref<18x18x8xf32, #tpu.memory_space<vmem>>, vector<16x16x8xf32>
    tpu.vector_store %arg7[%c1_19, %c1_20, %c0_21], %15 {strides = array<i32>} : memref<18x18x8xf32, #tpu.memory_space<vmem>>, vector<16x16x8xf32>,
    %c0_22 = arith.constant 0 : index
    %c0_23 = arith.constant 0 : index
    %c0_24 = arith.constant 0 : index
    %17 = vector.load %arg7[%c0_22, %c0_23, %c0_24] : memref<18x18x8xf32, #tpu.memory_space<vmem>>, vector<16x16x8xf32>
    %18 = vector.shape_cast %17 : vector<16x16x8xf32> to vector<256x8xf32>
    %c0_25 = arith.constant 0 : index
    %c0_26 = arith.constant 0 : index
    %19 = vector.load %arg8[%c0_25, %c0_26] : memref<256x72xf32, #tpu.memory_space<vmem>>, vector<256x8xf32>
    tpu.vector_store %arg8[%c0_25, %c0_26], %18 {strides = array<i32>} : memref<256x72xf32, #tpu.memory_space<vmem>>, vector<256x8xf32>,
    %c0_27 = arith.constant 0 : index
    %c1_28 = arith.constant 1 : index
    %c0_29 = arith.constant 0 : index
    %20 = vector.load %arg7[%c0_27, %c1_28, %c0_29] : memref<18x18x8xf32, #tpu.memory_space<vmem>>, vector<16x16x8xf32>
    %21 = vector.shape_cast %20 : vector<16x16x8xf32> to vector<256x8xf32>
    %c0_30 = arith.constant 0 : index
    %c8 = arith.constant 8 : index
    %22 = vector.load %arg8[%c0_30, %c8] : memref<256x72xf32, #tpu.memory_space<vmem>>, vector<256x8xf32>
    tpu.vector_store %arg8[%c0_30, %c8], %21 {strides = array<i32>} : memref<256x72xf32, #tpu.memory_space<vmem>>, vector<256x8xf32>,
    %c0_31 = arith.constant 0 : index
    %c2 = arith.constant 2 : index
    %c0_32 = arith.constant 0 : index
    %23 = vector.load %arg7[%c0_31, %c2, %c0_32] : memref<18x18x8xf32, #tpu.memory_space<vmem>>, vector<16x16x8xf32>
    %24 = vector.shape_cast %23 : vector<16x16x8xf32> to vector<256x8xf32>
    %c0_33 = arith.constant 0 : index
    %c16 = arith.constant 16 : index
    %25 = vector.load %arg8[%c0_33, %c16] : memref<256x72xf32, #tpu.memory_space<vmem>>, vector<256x8xf32>
    tpu.vector_store %arg8[%c0_33, %c16], %24 {strides = array<i32>} : memref<256x72xf32, #tpu.memory_space<vmem>>, vector<256x8xf32>,
    %c1_34 = arith.constant 1 : index
    %c0_35 = arith.constant 0 : index
    %c0_36 = arith.constant 0 : index
    %26 = vector.load %arg7[%c1_34, %c0_35, %c0_36] : memref<18x18x8xf32, #tpu.memory_space<vmem>>, vector<16x16x8xf32>
    %27 = vector.shape_cast %26 : vector<16x16x8xf32> to vector<256x8xf32>
    %c0_37 = arith.constant 0 : index
    %c24 = arith.constant 24 : index
    %28 = vector.load %arg8[%c0_37, %c24] : memref<256x72xf32, #tpu.memory_space<vmem>>, vector<256x8xf32>
    tpu.vector_store %arg8[%c0_37, %c24], %27 {strides = array<i32>} : memref<256x72xf32, #tpu.memory_space<vmem>>, vector<256x8xf32>,
    %c1_38 = arith.constant 1 : index
    %c1_39 = arith.constant 1 : index
    %c0_40 = arith.constant 0 : index
    %29 = vector.load %arg7[%c1_38, %c1_39, %c0_40] : memref<18x18x8xf32, #tpu.memory_space<vmem>>, vector<16x16x8xf32>
    %30 = vector.shape_cast %29 : vector<16x16x8xf32> to vector<256x8xf32>
    %c0_41 = arith.constant 0 : index
    %c32 = arith.constant 32 : index
    %31 = vector.load %arg8[%c0_41, %c32] : memref<256x72xf32, #tpu.memory_space<vmem>>, vector<256x8xf32>
    tpu.vector_store %arg8[%c0_41, %c32], %30 {strides = array<i32>} : memref<256x72xf32, #tpu.memory_space<vmem>>, vector<256x8xf32>,
    %c1_42 = arith.constant 1 : index
    %c2_43 = arith.constant 2 : index
    %c0_44 = arith.constant 0 : index
    %32 = vector.load %arg7[%c1_42, %c2_43, %c0_44] : memref<18x18x8xf32, #tpu.memory_space<vmem>>, vector<16x16x8xf32>
    %33 = vector.shape_cast %32 : vector<16x16x8xf32> to vector<256x8xf32>
    %c0_45 = arith.constant 0 : index
    %c40 = arith.constant 40 : index
    %34 = vector.load %arg8[%c0_45, %c40] : memref<256x72xf32, #tpu.memory_space<vmem>>, vector<256x8xf32>
    tpu.vector_store %arg8[%c0_45, %c40], %33 {strides = array<i32>} : memref<256x72xf32, #tpu.memory_space<vmem>>, vector<256x8xf32>,
    %c2_46 = arith.constant 2 : index
    %c0_47 = arith.constant 0 : index
    %c0_48 = arith.constant 0 : index
    %35 = vector.load %arg7[%c2_46, %c0_47, %c0_48] : memref<18x18x8xf32, #tpu.memory_space<vmem>>, vector<16x16x8xf32>
    %36 = vector.shape_cast %35 : vector<16x16x8xf32> to vector<256x8xf32>
    %c0_49 = arith.constant 0 : index
    %c48 = arith.constant 48 : index
    %37 = vector.load %arg8[%c0_49, %c48] : memref<256x72xf32, #tpu.memory_space<vmem>>, vector<256x8xf32>
    tpu.vector_store %arg8[%c0_49, %c48], %36 {strides = array<i32>} : memref<256x72xf32, #tpu.memory_space<vmem>>, vector<256x8xf32>,
    %c2_50 = arith.constant 2 : index
    %c1_51 = arith.constant 1 : index
    %c0_52 = arith.constant 0 : index
    %38 = vector.load %arg7[%c2_50, %c1_51, %c0_52] : memref<18x18x8xf32, #tpu.memory_space<vmem>>, vector<16x16x8xf32>
    %39 = vector.shape_cast %38 : vector<16x16x8xf32> to vector<256x8xf32>
    %c0_53 = arith.constant 0 : index
    %c56 = arith.constant 56 : index
    %40 = vector.load %arg8[%c0_53, %c56] : memref<256x72xf32, #tpu.memory_space<vmem>>, vector<256x8xf32>
    tpu.vector_store %arg8[%c0_53, %c56], %39 {strides = array<i32>} : memref<256x72xf32, #tpu.memory_space<vmem>>, vector<256x8xf32>,
    %c2_54 = arith.constant 2 : index
    %c2_55 = arith.constant 2 : index
    %c0_56 = arith.constant 0 : index
    %41 = vector.load %arg7[%c2_54, %c2_55, %c0_56] : memref<18x18x8xf32, #tpu.memory_space<vmem>>, vector<16x16x8xf32>
    %42 = vector.shape_cast %41 : vector<16x16x8xf32> to vector<256x8xf32>
    %c0_57 = arith.constant 0 : index
    %c64 = arith.constant 64 : index
    %43 = vector.load %arg8[%c0_57, %c64] : memref<256x72xf32, #tpu.memory_space<vmem>>, vector<256x8xf32>
    tpu.vector_store %arg8[%c0_57, %c64], %42 {strides = array<i32>} : memref<256x72xf32, #tpu.memory_space<vmem>>, vector<256x8xf32>,
    %c0_58 = arith.constant 0 : index
    %c0_59 = arith.constant 0 : index
    %44 = vector.load %arg8[%c0_58, %c0_59] : memref<256x72xf32, #tpu.memory_space<vmem>>, vector<256x72xf32>
    %c0_60 = arith.constant 0 : index
    %c0_61 = arith.constant 0 : index
    %45 = vector.load %arg4[%c0_60, %c0_61] : memref<72x16xf32, #tpu.memory_space<vmem>>, vector<72x16xf32>
    %cst_62 = arith.constant dense<0.000000e+00> : vector<256x16xf32>
    %46 = tpu.matmul %44, %45, %cst_62 {dimension_numbers = #tpu.dot_dimension_numbers<[1], [0], [0], [1], [0, 0, 1, 1], [], []>} : vector<256x72xf32>, vector<72x16xf32>, vector<256x16xf32> -> vector<256x16xf32>
    %c0_63 = arith.constant 0 : index
    %c0_64 = arith.constant 0 : index
    %47 = vector.load %arg5[%c0_63, %c0_64] : memref<1x16xf32, #tpu.memory_space<vmem>>, vector<1x16xf32>
    %48 = vector.broadcast %47 : vector<1x16xf32> to vector<256x16xf32>
    %49 = arith.addf %46, %48 : vector<256x16xf32>
    %cst_65 = arith.constant 0.000000e+00 : f32
    %50 = vector.broadcast %cst_65 : f32 to vector<256x16xf32>
    %51 = arith.maximumf %49, %50 : vector<256x16xf32>
    %52 = vector.shape_cast %51 : vector<256x16xf32> to vector<1x256x16xf32>
    %c0_66 = arith.constant 0 : index
    %c0_67 = arith.constant 0 : index
    %c0_68 = arith.constant 0 : index
    %53 = vector.load %arg6[%c0_66, %c0_67, %c0_68] : memref<1x256x16xf32, #tpu.memory_space<vmem>>, vector<1x256x16xf32>
    tpu.vector_store %arg6[%c0_66, %c0_67, %c0_68], %52 {strides = array<i32>} : memref<1x256x16xf32, #tpu.memory_space<vmem>>, vector<1x256x16xf32>,
    return
  }
  func.func @transform_0(%arg0: i32) -> (i32, i32, i32) {
    %c0_i32 = arith.constant 0 : i32
    %c0_i32_0 = arith.constant 0 : i32
    %c0_i32_1 = arith.constant 0 : i32
    return %arg0, %c0_i32, %c0_i32_0 : i32, i32, i32
  }
  func.func @transform_1(%arg0: i32) -> (i32, i32) {
    %c0_i32 = arith.constant 0 : i32
    %c0_i32_0 = arith.constant 0 : i32
    %c0_i32_1 = arith.constant 0 : i32
    return %c0_i32, %c0_i32_0 : i32, i32
  }
  func.func @transform_2(%arg0: i32) -> (i32, i32) {
    %c0_i32 = arith.constant 0 : i32
    %c0_i32_0 = arith.constant 0 : i32
    %c0_i32_1 = arith.constant 0 : i32
    return %c0_i32, %c0_i32_0 : i32, i32
  }
  func.func @transform_3(%arg0: i32) -> (i32, i32) {
    %c0_i32 = arith.constant 0 : i32
    %c0_i32_0 = arith.constant 0 : i32
    %c0_i32_1 = arith.constant 0 : i32
    return %c0_i32, %c0_i32_0 : i32, i32
  }
  func.func @transform_4(%arg0: i32) -> (i32, i32) {
    %c0_i32 = arith.constant 0 : i32
    %c0_i32_0 = arith.constant 0 : i32
    %c0_i32_1 = arith.constant 0 : i32
    return %c0_i32, %c0_i32_0 : i32, i32
  }
  func.func @transform_5(%arg0: i32) -> (i32, i32, i32) {
    %c0_i32 = arith.constant 0 : i32
    %c0_i32_0 = arith.constant 0 : i32
    %c0_i32_1 = arith.constant 0 : i32
    return %arg0, %c0_i32, %c0_i32_0 : i32, i32, i32
  }
}

</mosaic_0001>

<bundles_post_ra>
// kernel: tpu_custom_call.1
= control target key start
LH: loop header
LB: loop body
LE: loop exit
PB: predicated region body
PF: predicated region fallthrough
CT: control target
= control target key end

     0   :  { %s2729_s18 = smov 0   ;;  %s3936_s0 = inlined_call_operand.vmem [shape: f32[2,256,36], index: 0, kind: input, shape index: {}]   ;;  %s3937_s1 = inlined_call_operand.vmem [shape: f32[36,8], index: 1, kind: input, shape index: {}]   ;;  %s3938_s2 = inlined_call_operand.vmem [shape: f32[1,8], index: 2, kind: input, shape index: {}]   ;;  %s3939_s3 = inlined_call_operand.vmem [shape: f32[72,16], index: 3, kind: input, shape index: {}]   ;;  %s3940_s4 = inlined_call_operand.vmem [shape: f32[1,16], index: 4, kind: input, shape index: {}]   ;;  %s3941_s5 = inlined_call_operand.vmem [shape: f32[2,256,16], index: 5, kind: output, shape index: {}]  }
   0x1 LB: > { %s2571_s19 = sadd.s32 4294967295, %s2688_s18   ;;  %p2575_p0 = scmp.ge.s32.totalorder %s2688_s18, 1  ;;  %s2688_s18 = sphi %s2729_s18, %s15_s18  }
   0x2   : > { %p187_p1 = scmp.lt.s32.totalorder %s2688_s18, 3 }
   0x4   : > { %p188_p2 = pnand %p2575_p0, %p187_p1 }
   0x5   : > { %p215_p3 = scmp.lt.s32.totalorder (!%p188_p2), %s2571_s19, 1  ;;  %s2691_s9 = smov (!%p188_p2), 8  }
   0x6   : > { %191 = sbr.rel (%p188_p2) target bundleno = 1089 (0x441), region = 40  ;;  %s2692_s10 = smov (!%p188_p2), 16  }
   0x7   : > { %s2693_s13 = smov (!%p188_p2), 32   ;;  %s2694_s14 = smov (!%p188_p2), 24  }
   0x8   : > { %s2695_s15 = smov (!%p188_p2), 40   ;;  %s2696_s16 = smov (!%p188_p2), 56  }
   0x9   : > { %s2697_s17 = smov (!%p188_p2), 48   ;;  %s2698_s20 = smov (!%p188_p2), 64  }
   0xb   : > { %v261_v0 = vld [vmem:[%s3937_s1 + $0x20] sm:$0xf]  ;;  %vm363_vm0 = vcmask 1043456   ;;  %v260_v1 = vld [vmem:[%s3937_s1 + $0x18] sm:$0xff]  ;;  %v259_v2 = vld [vmem:[%s3937_s1 + $0x10] sm:$0xff]  ;;  %s3943_s19 = smov (!%p215_p3, %s2571_s19), 1 }
   0xc   : > { %2580 = vmatpush.msk.msra.mxu0 %vm363_vm0, %v261_v0  ;;  %2649 = vmatpush.msk.msra.mxu3 %vm363_vm0, %v261_v0  ;;  %v258_v3 = vld [vmem:[%s3937_s1 + $0x8] sm:$0xff]  ;;  %s2647_s28 = sshll.u32 %s3943_s19, 8  ;;  %v257_v4 = vld [vmem:[%s3937_s1] sm:$0xff]  ;;  %vm266_vm1 = vcmask 293888   ;;  %vm512_vm2 = vcmask 64512   ;;  %v2690_v22 = vmov 0.0  }
   0xd   : > { %s2757_s6 = scalar_lea.vmem %s3936_s0, %s2647_s28  ;;  %513 = vst.msk [vmem:[#allocation2] sm:$0xff] %vm512_vm2, %v2690_v22  ;;  %vm515_vm3 = vcmask 58368   ;;  %vm522_vm4 = vcmask 57344   ;;  %v2879_v36 = vld [vmem:[%s3938_s2] ss:$0 sm:$0xff]  ;;  %vm811_vm5 = vcmask 130112   ;;  %s3761_s25 = scalar_lea.vmem %s3941_s5, %s2647_s28 }
   0xe   : > { %379 = vmatpush.msra.mxu0 %v260_v1  ;;  %2650 = vmatpush.msra.mxu3 %v260_v1  ;;  %v225_v5 = vld [vmem:[%s2757_s6] sm:$0xff]  ;;  %v242_v6 = vld [vmem:[%s2757_s6 + $0x88] sm:$0xff]  ;;  %v243_v8 = vld [vmem:[%s2757_s6 + $0x90] sm:$0xff]  ;;  %514 = vst.msk [vmem:[#allocation2 + $0x8] sm:$0xff] %vm512_vm2, %v2690_v22  ;;  %vm1004_vm6 = vcmask 195712   ;;  %vm1197_vm7 = vcmask 261312  }
   0xf   : > { %v226_v7 = vld [vmem:[%s2757_s6 + $0x8] sm:$0xff]  ;;  %v227_v9 = vld [vmem:[%s2757_s6 + $0x10] sm:$0xff]  ;;  %v244_v10 = vld [vmem:[%s2757_s6 + $0x98] sm:$0xff]  ;;  %518 = vst.msk [vmem:[#allocation2 + $0x198] sm:$0xff] %vm512_vm2, %v2690_v22  ;;  %vm1390_vm8 = vcmask 326912   ;;  %vm1583_vm9 = vcmask 392512  }
  0x10   : > { %380 = vmatpush.msra.mxu0 %v259_v2  ;;  %2651 = vmatpush.msra.mxu3 %v259_v2  ;;  %v228_v11 = vld [vmem:[%s2757_s6 + $0x18] sm:$0xff]  ;;  %v245_v12 = vld [vmem:[%s2757_s6 + $0xa0] sm:$0xff]  ;;  %v246_v14 = vld [vmem:[%s2757_s6 + $0xa8] sm:$0xff]  ;;  %519 = vst.msk [vmem:[#allocation2 + $0x1a0] sm:$0xff] %vm512_vm2, %v2690_v22  ;;  %vm1777_vm10 = vcmask 458112   ;;  %vm1970_vm11 = vcmask 523712  }
  0x11   : > { %v229_v13 = vld [vmem:[%s2757_s6 + $0x20] sm:$0xff]  ;;  %v230_v15 = vld [vmem:[%s2757_s6 + $0x28] sm:$0xff]  ;;  %v231_v16 = vld [vmem:[%s2757_s6 + $0x30] sm:$0xff]  ;;  %516 = vst.msk [vmem:[#allocation2 + $0x10] sm:$0x3] %vm515_vm3, %v2690_v22  ;;  %vm2163_vm12 = vcmask 589312  }
  0x12   : > { %381 = vmatpush.msra.mxu0 %v258_v3  ;;  %2652 = vmatpush.msra.mxu3 %v258_v3  ;;  %v247_v17 = vld [vmem:[%s2757_s6 + $0xb0] sm:$0xff]  ;;  %v232_v18 = vld [vmem:[%s2757_s6 + $0x38] sm:$0xff]  ;;  %v233_v19 = vld [vmem:[%s2757_s6 + $0x40] sm:$0xff]  ;;  %520 = vst.msk [vmem:[#allocation2 + $0x1a8] sm:$0x3] %vm515_vm3, %v2690_v22  ;;  %vm2241_vm13 = vcmask 588800  }
  0x13   : > { %v248_v20 = vld [vmem:[%s2757_s6 + $0xb8] sm:$0xff]  ;;  %v234_v21 = vld [vmem:[%s2757_s6 + $0x48] sm:$0xff]  ;;  %v235_v23 = vld [vmem:[%s2757_s6 + $0x50] sm:$0xff]  ;;  %539 = vst.msk [vmem:[#allocation2 + $0x29] sm:$0x1] %vm522_vm4, %v2690_v22  ;;  %vm2483_vm14 = vcmask 130048  }
  0x14   : > { %382 = vmatpush.msra.mxu0 %v257_v4  ;;  %2653 = vmatpush.msra.mxu3 %v257_v4  ;;  %v236_v25 = vld [vmem:[%s2757_s6 + $0x58] sm:$0xff]  ;;  %v249_v27 = vld [vmem:[%s2757_s6 + $0xc0] sm:$0xff]  ;;  %v250_v30 = vld [vmem:[%s2757_s6 + $0xc8] sm:$0xff]  ;;  %523 = vst.msk [vmem:[#allocation2 + $0x18] sm:$0x1] %vm522_vm4, %v2690_v22 }
  0x15   : > { %2581 = vmatmul.msk.f32.vlgmr.msra.gmra.mxu0 %vm266_vm1, %v225_v5  ;;  %2598 = vmatmul.msk.f32.vlgmr.msra.gmra.mxu3 %vm266_vm1, %v242_v6  ;;  %v651_v24 = vld [vmem:[#allocation2 + $0x1] sm:$0xff]  ;;  %524 = vst.msk [vmem:[#allocation2 + $0x30] sm:$0x1] %vm522_vm4, %v2690_v22  ;;  %v239_v33 = vld [vmem:[%s2757_s6 + $0x70] sm:$0xff]  ;;  %v240_v35 = vld [vmem:[%s2757_s6 + $0x78] sm:$0xff] }
  0x16   : > { %715 = vrot.lane.b32.xlu0 %v651_v24, %s2691_s9  ;;  %v237_v28 = vld [vmem:[%s2757_s6 + $0x60] sm:$0xff]  ;;  %v238_v31 = vld [vmem:[%s2757_s6 + $0x68] sm:$0xff]  ;;  %525 = vst.msk [vmem:[#allocation2 + $0x48] sm:$0x1] %vm522_vm4, %v2690_v22  ;;  %v251_v34 = vld [vmem:[%s2757_s6 + $0xd0] sm:$0xff] }
  0x17   : > { %526 = vst.msk [vmem:[#allocation2 + $0x60] sm:$0x1] %vm522_vm4, %v2690_v22  ;;  %v844_v32 = vld [vmem:[#allocation2 + $0x2] sm:$0xff]  ;;  %v252_v41 = vld [vmem:[%s2757_s6 + $0xd8] sm:$0xff] }
  0x18   : > { %v652_v26 = vld [vmem:[#allocation2 + $0x9] sm:$0xff]  ;;  %527 = vst.msk [vmem:[#allocation2 + $0x78] sm:$0x1] %vm522_vm4, %v2690_v22  ;;  %908 = vrot.lane.b32.xlu2 %v844_v32, %s2692_s10  ;;  %v241_v38 = vld [vmem:[%s2757_s6 + $0x80] sm:$0xff] }
  0x19   : > { %v845_v29 = vld [vmem:[#allocation2 + $0xa] sm:$0xff]  ;;  %528 = vst.msk [vmem:[#allocation2 + $0x90] sm:$0x1] %vm522_vm4, %v2690_v22  ;;  %v253_v4 = vld [vmem:[%s2757_s6 + $0xe0] sm:$0xff] }
  0x1a   : > { %529 = vst.msk [vmem:[#allocation2 + $0xa8] sm:$0x1] %vm522_vm4, %v2690_v22 }
  0x1b   : > { %530 = vst.msk [vmem:[#allocation2 + $0xc0] sm:$0x1] %vm522_vm4, %v2690_v22 }
  0x1c   : > { %531 = vst.msk [vmem:[#allocation2 + $0xd8] sm:$0x1] %vm522_vm4, %v2690_v22 }
  0x1d   : > { %2582 = vmatmul.msk.f32.gmra.mxu0 %vm266_vm1, %v226_v7  ;;  %2599 = vmatmul.msk.f32.gmra.mxu3 %vm266_vm1, %v243_v8  ;;  %532 = vst.msk [vmem:[#allocation2 + $0xf0] sm:$0x1] %vm522_vm4, %v2690_v22 }
  0x1e   : > { %717 = vrot.lane.b32.xlu0 %v652_v26, %s2691_s9  ;;  %533 = vst.msk [vmem:[#allocation2 + $0x108] sm:$0x1] %vm522_vm4, %v2690_v22 }
  0x1f   : > { %534 = vst.msk [vmem:[#allocation2 + $0x120] sm:$0x1] %vm522_vm4, %v2690_v22 }
  0x20   : > { %535 = vst.msk [vmem:[#allocation2 + $0x138] sm:$0x1] %vm522_vm4, %v2690_v22 }
  0x21   : > { %536 = vst.msk [vmem:[#allocation2 + $0x150] sm:$0x1] %vm522_vm4, %v2690_v22 }
  0x22   : > { %537 = vst.msk [vmem:[#allocation2 + $0x168] sm:$0x1] %vm522_vm4, %v2690_v22 }
  0x23   : > { %538 = vst.msk [vmem:[#allocation2 + $0x180] sm:$0x1] %vm522_vm4, %v2690_v22 }
  0x24   : > { %540 = vst.msk [vmem:[#allocation2 + $0x41] sm:$0x1] %vm522_vm4, %v2690_v22 }
  0x25   : > { %2583 = vmatmul.msk.f32.gmra.mxu0 %vm266_vm1, %v227_v9  ;;  %2600 = vmatmul.msk.f32.gmra.mxu3 %vm266_vm1, %v244_v10  ;;  %541 = vst.msk [vmem:[#allocation2 + $0x59] sm:$0x1] %vm522_vm4, %v2690_v22 }
  0x26   : > { %910 = vrot.lane.b32.xlu0 %v845_v29, %s2692_s10  ;;  %542 = vst.msk [vmem:[#allocation2 + $0x71] sm:$0x1] %vm522_vm4, %v2690_v22 }
  0x27   : > { %543 = vst.msk [vmem:[#allocation2 + $0x89] sm:$0x1] %vm522_vm4, %v2690_v22 }
  0x28   : > { %544 = vst.msk [vmem:[#allocation2 + $0xa1] sm:$0x1] %vm522_vm4, %v2690_v22 }
  0x29   : > { %545 = vst.msk [vmem:[#allocation2 + $0xb9] sm:$0x1] %vm522_vm4, %v2690_v22 }
  0x2a   : > { %546 = vst.msk [vmem:[#allocation2 + $0xd1] sm:$0x1] %vm522_vm4, %v2690_v22 }
  0x2b   : > { %547 = vst.msk [vmem:[#allocation2 + $0xe9] sm:$0x1] %vm522_vm4, %v2690_v22 }
  0x2c   : > { %548 = vst.msk [vmem:[#allocation2 + $0x101] sm:$0x1] %vm522_vm4, %v2690_v22 }
  0x2d   : > { %2584 = vmatmul.msk.f32.gmra.mxu0 %vm266_vm1, %v228_v11  ;;  %2601 = vmatmul.msk.f32.gmra.mxu3 %vm266_vm1, %v245_v12  ;;  %549 = vst.msk [vmem:[#allocation2 + $0x119] sm:$0x1] %vm522_vm4, %v2690_v22 }
  0x2e   : > { %550 = vst.msk [vmem:[#allocation2 + $0x131] sm:$0x1] %vm522_vm4, %v2690_v22 }
  0x2f   : > { %551 = vst.msk [vmem:[#allocation2 + $0x149] sm:$0x1] %vm522_vm4, %v2690_v22 }
  0x30   : > { %552 = vst.msk [vmem:[#allocation2 + $0x161] sm:$0x1] %vm522_vm4, %v2690_v22 }
  0x31   : > { %553 = vst.msk [vmem:[#allocation2 + $0x179] sm:$0x1] %vm522_vm4, %v2690_v22 }
  0x32   : > { %554 = vst.msk [vmem:[#allocation2 + $0x191] sm:$0x1] %vm522_vm4, %v2690_v22 }
  0x35   : > { %2585 = vmatmul.msk.f32.gmra.mxu0 %vm266_vm1, %v229_v13  ;;  %2602 = vmatmul.msk.f32.gmra.mxu3 %vm266_vm1, %v246_v14 }
  0x3d   : > { %2586 = vmatmul.msk.f32.gmra.mxu0 %vm266_vm1, %v230_v15  ;;  %2603 = vmatmul.msk.f32.gmra.mxu3 %vm266_vm1, %v247_v17  ;;  %v254_v15 = vld [vmem:[%s2757_s6 + $0xe8] sm:$0xff] }
  0x45   : > { %2587 = vmatmul.msk.f32.gmra.mxu0 %vm266_vm1, %v231_v16  ;;  %2604 = vmatmul.msk.f32.gmra.mxu3 %vm266_vm1, %v248_v20 }
  0x4d   : > { %2588 = vmatmul.msk.f32.gmra.mxu0 %vm266_vm1, %v232_v18  ;;  %2605 = vmatmul.msk.f32.gmra.mxu3 %vm266_vm1, %v249_v27 }
  0x55   : > { %2589 = vmatmul.msk.f32.gmra.mxu0 %vm266_vm1, %v233_v19  ;;  %2606 = vmatmul.msk.f32.gmra.mxu3 %vm266_vm1, %v250_v30 }
  0x5d   : > { %2590 = vmatmul.msk.f32.gmra.mxu0 %vm266_vm1, %v234_v21  ;;  %2607 = vmatmul.msk.f32.gmra.mxu3 %vm266_vm1, %v251_v34 }
  0x65   : > { %2591 = vmatmul.msk.f32.gmra.mxu0 %vm266_vm1, %v235_v23  ;;  %2608 = vmatmul.msk.f32.gmra.mxu3 %vm266_vm1, %v252_v41 }
  0x6d   : > { %2592 = vmatmul.msk.f32.gmra.mxu0 %vm266_vm1, %v236_v25  ;;  %2609 = vmatmul.msk.f32.gmra.mxu3 %vm266_vm1, %v253_v4 }
  0x75   : > { %2593 = vmatmul.msk.f32.gmra.mxu0 %vm266_vm1, %v237_v28  ;;  %2610 = vmatmul.msk.f32.gmra.mxu3 %vm266_vm1, %v254_v15 }
  0x7d   : > { %2594 = vmatmul.msk.f32.gmra.mxu0 %vm266_vm1, %v238_v31 }
  0x85   : > { %2595 = vmatmul.msk.f32.gmra.mxu0 %vm266_vm1, %v239_v33 }
  0x8d   : > { %2596 = vmatmul.msk.f32.gmra.mxu0 %vm266_vm1, %v240_v35 }
  0x92   : > { %v384_v37 = vpop.f32.mrf.mxu0 }
  0x93   : > { %v385_v39 = vadd.f32 %v2879_v36, %v384_v37 }
  0x95   : > { %v480_v40 = vmax.f32 %v385_v39, 0.0  ;;  %2597 = vmatmul.msk.f32.gmra.mxu0 %vm266_vm1, %v241_v38 }
  0x97   : > { %555 = vst.msk [vmem:[#allocation2 + $0x19] sm:$0xff] %vm512_vm2, %v480_v40 }
  0x98   : > { %v435_v42 = vpop.f32.mrf.mxu3 }
  0x99   : > { %v436_v43 = vadd.f32 %v2879_v36, %v435_v42 }
  0x9a   : > { %v387_v44 = vpop.f32.mrf.mxu0 }
  0x9b   : > { %v388_v45 = vadd.f32 %v2879_v36, %v387_v44  ;;  %v497_v46 = vmax.f32 %v436_v43, 0.0 }
  0x9d   : > { %v481_v47 = vmax.f32 %v388_v45, 0.0  ;;  %572 = vst.msk [vmem:[#allocation2 + $0xe1] sm:$0xff] %vm512_vm2, %v497_v46 }
  0x9e   : > { %v1230_v48 = vld [vmem:[#allocation2 + $0x19] sm:$0xff] }
  0x9f   : > { %v1037_v49 = vld [vmem:[#allocation2 + $0x18] sm:$0xff]  ;;  %556 = vst.msk [vmem:[#allocation2 + $0x21] sm:$0xff] %vm512_vm2, %v481_v47  ;;  %1294 = vrot.lane.b32.xlu0 %v1230_v48, %s2693_s13  ;;  %719 = vrot.lane.b32.xlu1 %v1230_v48, %s2691_s9  ;;  %v255_v47 = vld [vmem:[%s2757_s6 + $0xf0] sm:$0xff]  ;;  %v587_v48 = vld [vmem:[#allocation2] sm:$0xff] }
  0xa0   : > { %v438_v50 = vpop.f32.mrf.mxu3  ;;  %621 = vst.msk [vmem:[#allocation3 + $0x10] sm:$0xff] %vm512_vm2, %v1037_v49  ;;  %2611 = vmatmul.msk.f32.gmra.mxu3 %vm266_vm1, %v255_v47 }
  0xa1   : > { %v439_v51 = vadd.f32 %v2879_v36, %v438_v50  ;;  %619 = vst.msk [vmem:[#allocation3] sm:$0xff] %vm512_vm2, %v587_v48 }
  0xa2   : > { %v390_v52 = vpop.f32.mrf.mxu0 }
  0xa3   : > { %v391_v53 = vadd.f32 %v2879_v36, %v390_v52  ;;  %v498_v54 = vmax.f32 %v439_v51, 0.0  ;;  %v909_v51 = vpop.permute.xlu2 %908 }
  0xa4   : > { %v863_v55 = vld [vmem:[#allocation2 + $0xe2] sm:$0xff] }
  0xa5   : > { %v482_v56 = vmax.f32 %v391_v53, 0.0  ;;  %573 = vst.msk [vmem:[#allocation2 + $0xf1] sm:$0xff] %vm512_vm2, %v498_v54  ;;  %v670_v2 = vld [vmem:[#allocation2 + $0xe1] sm:$0xff] }
  0xa6   : > { %v847_v57 = vld [vmem:[#allocation2 + $0x22] sm:$0xff]  ;;  %v846_v26 = vld [vmem:[#allocation2 + $0x1a] sm:$0xff] }
  0xa7   : > { %v1038_v58 = vld [vmem:[#allocation2 + $0x20] sm:$0xff]  ;;  %557 = vst.msk [vmem:[#allocation2 + $0x31] sm:$0xff] %vm512_vm2, %v482_v56  ;;  %914 = vrot.lane.b32.xlu2 %v847_v57, %s2692_s10  ;;  %946 = vrot.lane.b32.xlu0 %v863_v55, %s2692_s10 }
  0xa8   : > { %1101 = vrot.lane.b32.xlu1 %v1037_v49, %s2694_s14  ;;  %v441_v59 = vpop.f32.mrf.mxu3  ;;  %622 = vst.msk [vmem:[#allocation3 + $0x18] sm:$0xff] %vm512_vm2, %v1038_v58  ;;  %v654_v14 = vld [vmem:[#allocation2 + $0x21] sm:$0xff]  ;;  %v716_v49 = vpop.permute.xlu0 %715 }
  0xa9   : > { %v442_v60 = vadd.f32 %v2879_v36, %v441_v59  ;;  %812 = vst.msk [vmem:[#allocation3] sm:$0xff] %vm811_vm5, %v716_v49  ;;  %v256_v59 = vld [vmem:[%s2757_s6 + $0xf8] sm:$0xff] }
  0xaa   : > { %v393_v61 = vpop.f32.mrf.mxu0  ;;  %1005 = vst.msk [vmem:[#allocation3] sm:$0xff] %vm1004_vm6, %v909_v51  ;;  %2612 = vmatmul.msk.f32.gmra.mxu3 %vm266_vm1, %v256_v59 }
  0xab   : > { %v394_v62 = vadd.f32 %v2879_v36, %v393_v61  ;;  %v499_v63 = vmax.f32 %v442_v60, 0.0  ;;  %v588_v60 = vld [vmem:[#allocation2 + $0x8] sm:$0xff] }
  0xac   : > { %v2920_v0 = vld [vmem:[#allocation2 + $0xf0] sm:$0xff]  ;;  %620 = vst.msk [vmem:[#allocation3 + $0x8] sm:$0xff] %vm512_vm2, %v588_v60 }
  0xad   : > { %v483_v1 = vmax.f32 %v394_v62, 0.0  ;;  %574 = vst.msk [vmem:[#allocation2 + $0xf9] sm:$0xff] %vm512_vm2, %v499_v63  ;;  %v2934_v11 = vld [vmem:[#allocation2 + $0xf1] sm:$0xff] }
  0xae   : > { %v1039_v3 = vld [vmem:[#allocation2 + $0x30] sm:$0xff]  ;;  %639 = vst.msk [vmem:[#allocation3 + $0xa0] sm:$0xff] %vm512_vm2, %v2920_v0 }
  0xaf   : > { %558 = vst.msk [vmem:[#allocation2 + $0x39] sm:$0xff] %vm512_vm2, %v483_v1  ;;  %1105 = vrot.lane.b32.xlu0 %v1039_v3, %s2694_s14  ;;  %1103 = vrot.lane.b32.xlu2 %v1038_v58, %s2694_s14  ;;  %v655_v23 = vld [vmem:[#allocation2 + $0x31] sm:$0xff] }
  0xb0   : > { %753 = vrot.lane.b32.xlu1 %v670_v2, %s2691_s9  ;;  %v444_v5 = vpop.f32.mrf.mxu3  ;;  %623 = vst.msk [vmem:[#allocation3 + $0x20] sm:$0xff] %vm512_vm2, %v1039_v3  ;;  %v718_v61 = vpop.permute.xlu0 %717 }
  0xb1   : > { %v445_v6 = vadd.f32 %v2879_v36, %v444_v5  ;;  %813 = vst.msk [vmem:[#allocation3 + $0x8] sm:$0xff] %vm811_vm5, %v718_v61 }
  0xb2   : > { %v396_v7 = vpop.f32.mrf.mxu0 }
  0xb3   : > { %v397_v8 = vadd.f32 %v2879_v36, %v396_v7  ;;  %v500_v9 = vmax.f32 %v445_v6, 0.0 }
  0xb4   : > { %v672_v10 = vld [vmem:[#allocation2 + $0xf9] sm:$0xff] }
  0xb5   : > { %v1056_v12 = vld [vmem:[#allocation2 + $0xf8] sm:$0xff]  ;;  %v484_v13 = vmax.f32 %v397_v8, 0.0  ;;  %575 = vst.msk [vmem:[#allocation2 + $0x109] sm:$0xff] %vm512_vm2, %v500_v9 }
  0xb6   : > { %640 = vst.msk [vmem:[#allocation3 + $0xa8] sm:$0xff] %vm512_vm2, %v1056_v12  ;;  %v2943_v16 = vld [vmem:[#allocation2 + $0x38] sm:$0xff] }
  0xb7   : > { %559 = vst.msk [vmem:[#allocation2 + $0x49] sm:$0xff] %vm512_vm2, %v484_v13  ;;  %757 = vrot.lane.b32.xlu0 %v672_v10, %s2691_s9  ;;  %755 = vrot.lane.b32.xlu2 %v2934_v11, %s2691_s9  ;;  %v848_v22 = vld [vmem:[#allocation2 + $0x32] sm:$0xff]  ;;  %v865_v40 = vld [vmem:[#allocation2 + $0xfa] sm:$0xff] }
  0xb8   : > { %721 = vrot.lane.b32.xlu1 %v654_v14, %s2691_s9  ;;  %v447_v17 = vpop.f32.mrf.mxu3  ;;  %624 = vst.msk [vmem:[#allocation3 + $0x28] sm:$0xff] %vm512_vm2, %v2943_v16  ;;  %v1233_v29 = vld [vmem:[#allocation2 + $0x39] sm:$0xff]  ;;  %v911_v3 = vpop.permute.xlu0 %910 }
  0xb9   : > { %v448_v18 = vadd.f32 %v2879_v36, %v447_v17  ;;  %v864_v46 = vld [vmem:[#allocation2 + $0xf2] sm:$0xff]  ;;  %v849_v58 = vld [vmem:[#allocation2 + $0x3a] sm:$0xff]  ;;  %1006 = vst.msk [vmem:[#allocation3 + $0x8] sm:$0xff] %vm1004_vm6, %v911_v3 }
  0xba   : > { %v399_v19 = vpop.f32.mrf.mxu0 }
  0xbb   : > { %v400_v20 = vadd.f32 %v2879_v36, %v399_v19  ;;  %v501_v21 = vmax.f32 %v448_v18, 0.0 }
  0xbc   : > { %v1057_v25 = vld [vmem:[#allocation2 + $0x108] sm:$0xff] }
  0xbd   : > { %v485_v24 = vmax.f32 %v400_v20, 0.0  ;;  %576 = vst.msk [vmem:[#allocation2 + $0x111] sm:$0xff] %vm512_vm2, %v501_v21  ;;  %v3023_v9 = vld [vmem:[#allocation2 + $0x109] sm:$0xff] }
  0xbe   : > { %641 = vst.msk [vmem:[#allocation3 + $0xb0] sm:$0xff] %vm512_vm2, %v1057_v25  ;;  %v1041_v32 = vld [vmem:[#allocation2 + $0x48] sm:$0xff] }
  0xbf   : > { %560 = vst.msk [vmem:[#allocation2 + $0x51] sm:$0xff] %vm512_vm2, %v485_v24  ;;  %916 = vrot.lane.b32.xlu0 %v848_v22, %s2692_s10  ;;  %723 = vrot.lane.b32.xlu2 %v655_v23, %s2691_s9  ;;  %v2980_v44 = vld [vmem:[#allocation2 + $0x49] sm:$0xff] }
  0xc0   : > { %912 = vrot.lane.b32.xlu1 %v846_v26, %s2692_s10  ;;  %625 = vst.msk [vmem:[#allocation3 + $0x30] sm:$0xff] %vm512_vm2, %v1041_v32  ;;  %v450_v37 = vpop.f32.mrf.mxu3 }
  0xc1   : > { %v451_v38 = vadd.f32 %v2879_v36, %v450_v37 }
  0xc2   : > { %v402_v27 = vpop.f32.mrf.mxu0 }
  0xc3   : > { %v403_v28 = vadd.f32 %v2879_v36, %v402_v27  ;;  %v502_v41 = vmax.f32 %v451_v38, 0.0 }
  0xc4   : > { %v2958_v30 = vld [vmem:[#allocation2 + $0x110] sm:$0xff] }
  0xc5   : > { %v486_v31 = vmax.f32 %v403_v28, 0.0  ;;  %642 = vst.msk [vmem:[#allocation3 + $0xb8] sm:$0xff] %vm512_vm2, %v2958_v30  ;;  %v866_v54 = vld [vmem:[#allocation2 + $0x10a] sm:$0xff] }
  0xc6   : > { %v2967_v33 = vld [vmem:[#allocation2 + $0x50] sm:$0xff]  ;;  %577 = vst.msk [vmem:[#allocation2 + $0x121] sm:$0xff] %vm512_vm2, %v502_v41 }
  0xc7   : > { %561 = vst.msk [vmem:[#allocation2 + $0x61] sm:$0xff] %vm512_vm2, %v486_v31  ;;  %1300 = vrot.lane.b32.xlu0 %v1233_v29, %s2693_s13  ;;  %1298 = vrot.lane.b32.xlu2 %v655_v23, %s2693_s13  ;;  %v3016_v7 = vld [vmem:[#allocation2 + $0x111] sm:$0xff] }
  0xc8   : > { %1296 = vrot.lane.b32.xlu1 %v654_v14, %s2693_s13  ;;  %626 = vst.msk [vmem:[#allocation3 + $0x38] sm:$0xff] %vm512_vm2, %v2967_v33  ;;  %v453_v53 = vpop.f32.mrf.mxu3  ;;  %v3038_v18 = vld [vmem:[#allocation2 + $0x4a] sm:$0xff]  ;;  %v867_v31 = vld [vmem:[#allocation2 + $0x112] sm:$0xff] }
  0xc9   : > { %v454_v55 = vadd.f32 %v2879_v36, %v453_v53  ;;  %v1235_v28 = vld [vmem:[#allocation2 + $0x51] sm:$0xff] }
  0xca   : > { %v405_v34 = vpop.f32.mrf.mxu0 }
  0xcb   : > { %v406_v35 = vadd.f32 %v2879_v36, %v405_v34  ;;  %v503_v57 = vmax.f32 %v454_v55, 0.0 }
  0xcd   : > { %v487_v39 = vmax.f32 %v406_v35, 0.0  ;;  %578 = vst.msk [vmem:[#allocation2 + $0x129] sm:$0xff] %vm512_vm2, %v503_v57  ;;  %v1059_v2 = vld [vmem:[#allocation2 + $0x120] sm:$0xff] }
  0xce   : > { %643 = vst.msk [vmem:[#allocation3 + $0xc0] sm:$0xff] %vm512_vm2, %v1059_v2  ;;  %v3027_v10 = vld [vmem:[#allocation2 + $0x60] sm:$0xff] }
  0xcf   : > { %562 = vst.msk [vmem:[#allocation2 + $0x69] sm:$0xff] %vm512_vm2, %v487_v39  ;;  %1141 = vrot.lane.b32.xlu0 %v1057_v25, %s2694_s14  ;;  %950 = vrot.lane.b32.xlu2 %v865_v40, %s2692_s10  ;;  %v1236_v25 = vld [vmem:[#allocation2 + $0x61] sm:$0xff] }
  0xd0   : > { %1137 = vrot.lane.b32.xlu1 %v2920_v0, %s2694_s14  ;;  %v851_v0 = vld [vmem:[#allocation2 + $0x52] sm:$0xff]  ;;  %627 = vst.msk [vmem:[#allocation3 + $0x40] sm:$0xff] %vm512_vm2, %v3027_v10  ;;  %v456_v15 = vpop.f32.mrf.mxu3 }
  0xd1   : > { %v457_v19 = vadd.f32 %v2879_v36, %v456_v15 }
  0xd2   : > { %v408_v42 = vpop.f32.mrf.mxu0 }
  0xd3   : > { %v409_v43 = vadd.f32 %v2879_v36, %v408_v42  ;;  %v504_v20 = vmax.f32 %v457_v19, 0.0 }
  0xd4   : > { %v3010_v4 = vld [vmem:[#allocation2 + $0x128] sm:$0xff] }
  0xd5   : > { %v488_v45 = vmax.f32 %v409_v43, 0.0  ;;  %644 = vst.msk [vmem:[#allocation3 + $0xc8] sm:$0xff] %vm512_vm2, %v3010_v4  ;;  %v869_v35 = vld [vmem:[#allocation2 + $0x12a] sm:$0xff] }
  0xd6   : > { %579 = vst.msk [vmem:[#allocation2 + $0x139] sm:$0xff] %vm512_vm2, %v504_v20  ;;  %v3106_v60 = vld [vmem:[#allocation2 + $0x6a] sm:$0xff] }
  0xd7   : > { %563 = vst.msk [vmem:[#allocation2 + $0x79] sm:$0xff] %vm512_vm2, %v488_v45  ;;  %727 = vrot.lane.b32.xlu0 %v2980_v44, %s2691_s9  ;;  %1139 = vrot.lane.b32.xlu2 %v1056_v12, %s2694_s14  ;;  %v3029_v12 = vld [vmem:[#allocation2 + $0x68] sm:$0xff] }
  0xd8   : > { %948 = vrot.lane.b32.xlu1 %v864_v46, %s2692_s10  ;;  %628 = vst.msk [vmem:[#allocation3 + $0x48] sm:$0xff] %vm512_vm2, %v3029_v12  ;;  %v459_v23 = vpop.f32.mrf.mxu3 }
  0xd9   : > { %v460_v26 = vadd.f32 %v2879_v36, %v459_v23 }
  0xda   : > { %v411_v50 = vpop.f32.mrf.mxu0 }
  0xdb   : > { %v412_v52 = vadd.f32 %v2879_v36, %v411_v50 }
  0xdd   : > { %v489_v56 = vmax.f32 %v412_v52, 0.0  ;;  %v3075_v45 = vld [vmem:[#allocation2 + $0x138] sm:$0xff]  ;;  %v3088_v52 = vld [vmem:[#allocation2 + $0x69] sm:$0xff] }
  0xde   : > { %v3050_v24 = vld [vmem:[#allocation2 + $0x78] sm:$0xff]  ;;  %645 = vst.msk [vmem:[#allocation3 + $0xd0] sm:$0xff] %vm512_vm2, %v3075_v45 }
  0xdf   : > { %564 = vst.msk [vmem:[#allocation2 + $0x81] sm:$0xff] %vm512_vm2, %v489_v56  ;;  %952 = vrot.lane.b32.xlu0 %v866_v54, %s2692_s10  ;;  %725 = vrot.lane.b32.xlu2 %v1233_v29, %s2691_s9  ;;  %v505_v29 = vmax.f32 %v460_v26, 0.0  ;;  %v3094_v54 = vld [vmem:[#allocation2 + $0x122] sm:$0xff]  ;;  %v3142_v15 = vld [vmem:[#allocation2 + $0x139] sm:$0xff] }
  0xe0   : > { %918 = vrot.lane.b32.xlu1 %v849_v58, %s2692_s10  ;;  %629 = vst.msk [vmem:[#allocation3 + $0x50] sm:$0xff] %vm512_vm2, %v3050_v24  ;;  %v462_v41 = vpop.f32.mrf.mxu3  ;;  %v3166_v26 = vld [vmem:[#allocation2 + $0x79] sm:$0xff] }
  0xe1   : > { %580 = vst.msk [vmem:[#allocation2 + $0x141] sm:$0xff] %vm512_vm2, %v505_v29  ;;  %v463_v43 = vadd.f32 %v2879_v36, %v462_v41 }
  0xe2   : > { %v414_v62 = vpop.f32.mrf.mxu0 }
  0xe3   : > { %v415_v63 = vadd.f32 %v2879_v36, %v414_v62 }
  0xe5   : > { %v490_v1 = vmax.f32 %v415_v63, 0.0 }
  0xe6   : > { %v3084_v50 = vld [vmem:[#allocation2 + $0x80] sm:$0xff] }
  0xe7   : > { %565 = vst.msk [vmem:[#allocation2 + $0x91] sm:$0xff] %vm512_vm2, %v490_v1  ;;  %922 = vrot.lane.b32.xlu0 %v851_v0, %s2692_s10  ;;  %1109 = vrot.lane.b32.xlu2 %v1041_v32, %s2694_s14  ;;  %v3116_v0 = vld [vmem:[#allocation2 + $0x129] sm:$0xff]  ;;  %v3191_v41 = vld [vmem:[#allocation2 + $0x81] sm:$0xff] }
  0xe8   : > { %1107 = vrot.lane.b32.xlu1 %v2943_v16, %s2694_s14  ;;  %v3036_v16 = vld [vmem:[#allocation2 + $0x121] sm:$0xff]  ;;  %630 = vst.msk [vmem:[#allocation3 + $0x58] sm:$0xff] %vm512_vm2, %v3084_v50  ;;  %v465_v59 = vpop.f32.mrf.mxu3 }
  0xe9   : > { %v3081_v47 = vld [vmem:[#allocation2 + $0x140] sm:$0xff]  ;;  %v466_v61 = vadd.f32 %v2879_v36, %v465_v59 }
  0xea   : > { %v417_v5 = vpop.f32.mrf.mxu0  ;;  %646 = vst.msk [vmem:[#allocation3 + $0xd8] sm:$0xff] %vm512_vm2, %v3081_v47 }
  0xeb   : > { %v418_v6 = vadd.f32 %v2879_v36, %v417_v5  ;;  %v507_v63 = vmax.f32 %v466_v61, 0.0  ;;  %v3131_v5 = vld [vmem:[#allocation2 + $0x62] sm:$0xff] }
  0xed   : > { %v491_v8 = vmax.f32 %v418_v6, 0.0  ;;  %582 = vst.msk [vmem:[#allocation2 + $0x159] sm:$0xff] %vm512_vm2, %v507_v63 }
  0xef   : > { %566 = vst.msk [vmem:[#allocation2 + $0x99] sm:$0xff] %vm512_vm2, %v491_v8  ;;  %1111 = vrot.lane.b32.xlu0 %v2967_v33, %s2694_s14  ;;  %761 = vrot.lane.b32.xlu2 %v3016_v7, %s2691_s9 }
  0xf0   : > { %759 = vrot.lane.b32.xlu1 %v3023_v9, %s2691_s9 }
  0xf2   : > { %v420_v13 = vpop.f32.mrf.mxu0 }
  0xf3   : > { %v421_v14 = vadd.f32 %v2879_v36, %v420_v13 }
  0xf5   : > { %v492_v17 = vmax.f32 %v421_v14, 0.0  ;;  %v3140_v14 = vld [vmem:[#allocation2 + $0x7a] sm:$0xff] }
  0xf7   : > { %567 = vst.msk [vmem:[#allocation2 + $0xa9] sm:$0xff] %vm512_vm2, %v492_v17  ;;  %763 = vrot.lane.b32.xlu0 %v3036_v16, %s2691_s9  ;;  %920 = vrot.lane.b32.xlu2 %v3038_v18, %s2692_s10 }
  0xf8   : > { %1302 = vrot.lane.b32.xlu1 %v2980_v44, %s2693_s13  ;;  %v506_v44 = vmax.f32 %v463_v43, 0.0 }
  0xfa   : > { %v423_v21 = vpop.f32.mrf.mxu0  ;;  %581 = vst.msk [vmem:[#allocation2 + $0x151] sm:$0xff] %vm512_vm2, %v506_v44 }
  0xfb   : > { %v424_v22 = vadd.f32 %v2879_v36, %v423_v21  ;;  %v468_v21 = vpop.f32.mrf.mxu3 }
  0xfc   : > { %v469_v23 = vadd.f32 %v2879_v36, %v468_v21 }
  0xfd   : > { %v493_v27 = vmax.f32 %v424_v22, 0.0  ;;  %v3158_v22 = vld [vmem:[#allocation2 + $0x142] sm:$0xff] }
  0xff   : > { %568 = vst.msk [vmem:[#allocation2 + $0xb1] sm:$0xff] %vm512_vm2, %v493_v27  ;;  %1306 = vrot.lane.b32.xlu0 %v1236_v25, %s2693_s13  ;;  %1304 = vrot.lane.b32.xlu2 %v1235_v28, %s2693_s13 }
 0x100   : > { %954 = vrot.lane.b32.xlu1 %v867_v31, %s2692_s10  ;;  %v3174_v31 = vld [vmem:[#allocation2 + $0x91] sm:$0xff] }
 0x101   : > { %v3060_v32 = vpop.permute.xlu2 %914  ;;  %v1063_v55 = vld [vmem:[#allocation2 + $0x150] sm:$0xff]  ;;  %v3137_v13 = vld [vmem:[#allocation2 + $0x158] sm:$0xff] }
 0x102   : > { %v426_v33 = vpop.f32.mrf.mxu0  ;;  %647 = vst.msk [vmem:[#allocation3 + $0xe0] sm:$0xff] %vm512_vm2, %v1063_v55 }
 0x103   : > { %v427_v34 = vadd.f32 %v2879_v36, %v426_v33  ;;  %648 = vst.msk [vmem:[#allocation3 + $0xe8] sm:$0xff] %vm512_vm2, %v3137_v13 }
 0x105   : > { %v494_v37 = vmax.f32 %v427_v34, 0.0  ;;  %v3181_v34 = vld [vmem:[#allocation2 + $0x13a] sm:$0xff] }
 0x107   : > { %569 = vst.msk [vmem:[#allocation2 + $0xc1] sm:$0xff] %vm512_vm2, %v494_v37  ;;  %958 = vrot.lane.b32.xlu0 %v869_v35, %s2692_s10  ;;  %1145 = vrot.lane.b32.xlu2 %v1059_v2, %s2694_s14 }
 0x108   : > { %1143 = vrot.lane.b32.xlu1 %v2958_v30, %s2694_s14 }
 0x109   : > { %v1104_v38 = vpop.permute.xlu2 %1103 }
 0x10a   : > { %1199 = vst.msk [vmem:[#allocation3 + $0x8] sm:$0xff] %vm1197_vm7, %v1104_v38  ;;  %v429_v39 = vpop.f32.mrf.mxu0 }
 0x10b   : > { %v430_v40 = vadd.f32 %v2879_v36, %v429_v39 }
 0x10d   : > { %v495_v42 = vmax.f32 %v430_v40, 0.0  ;;  %v3189_v40 = vld [vmem:[#allocation2 + $0x152] sm:$0xff] }
 0x10f   : > { %570 = vst.msk [vmem:[#allocation2 + $0xc9] sm:$0xff] %vm512_vm2, %v495_v42  ;;  %1147 = vrot.lane.b32.xlu0 %v3010_v4, %s2694_s14  ;;  %731 = vrot.lane.b32.xlu2 %v1236_v25, %s2691_s9  ;;  %v3125_v4 = vld [vmem:[#allocation2 + $0x141] sm:$0xff]  ;;  %v508_v25 = vmax.f32 %v469_v23, 0.0 }
 0x110   : > { %729 = vrot.lane.b32.xlu1 %v1235_v28, %s2691_s9  ;;  %v3197_v42 = vld [vmem:[#allocation2 + $0x82] sm:$0xff] }
 0x111   : > { %v1295_v30 = vpop.permute.xlu0 %1294  ;;  %v756_v46 = vpop.permute.xlu2 %755  ;;  %583 = vst.msk [vmem:[#allocation2 + $0x169] sm:$0xff] %vm512_vm2, %v508_v25 }
 0x112   : > { %832 = vst.msk [vmem:[#allocation3 + $0xa0] sm:$0xff] %vm811_vm5, %v756_v46  ;;  %v720_v48 = vpop.permute.xlu1 %719  ;;  %v432_v49 = vpop.f32.mrf.mxu0  ;;  %v3205_v46 = vld [vmem:[#allocation2 + $0x9a] sm:$0xff] }
 0x113   : > { %814 = vst.msk [vmem:[#allocation3 + $0x10] sm:$0xff] %vm811_vm5, %v720_v48  ;;  %v433_v51 = vadd.f32 %v2879_v36, %v432_v49 }
 0x115   : > { %v496_v53 = vmax.f32 %v433_v51, 0.0 }
 0x117   : > { %571 = vst.msk [vmem:[#allocation2 + $0xd9] sm:$0xff] %vm512_vm2, %v496_v53  ;;  %733 = vrot.lane.b32.xlu0 %v3088_v52, %s2691_s9  ;;  %956 = vrot.lane.b32.xlu2 %v3094_v54, %s2692_s10  ;;  %v3216_v53 = vld [vmem:[#allocation2 + $0x159] sm:$0xff] }
 0x118   : > { %1113 = vrot.lane.b32.xlu1 %v3027_v10, %s2694_s14  ;;  %v1065_v43 = vld [vmem:[#allocation2 + $0x168] sm:$0xff] }
 0x119   : > { %v947_v56 = vpop.permute.xlu0 %946  ;;  %v724_v57 = vpop.permute.xlu2 %723  ;;  %649 = vst.msk [vmem:[#allocation3 + $0xf0] sm:$0xff] %vm512_vm2, %v1065_v43  ;;  %v3234_v63 = vld [vmem:[#allocation2 + $0x169] sm:$0xff] }
 0x11a   : > { %816 = vst.msk [vmem:[#allocation3 + $0x20] sm:$0xff] %vm811_vm5, %v724_v57  ;;  %v1102_v58 = vpop.permute.xlu1 %1101 }
 0x11b   : > { %1198 = vst.msk [vmem:[#allocation3] sm:$0xff] %vm1197_vm7, %v1102_v58 }
 0x11c   : > { %1391 = vst.msk [vmem:[#allocation3] sm:$0xff] %vm1390_vm8, %v1295_v30 }
 0x11e   : > { %v3110_v62 = vld [vmem:[#allocation2 + $0xe0] sm:$0xff] }
 0x11f   : > { %1117 = vrot.lane.b32.xlu0 %v3050_v24, %s2694_s14  ;;  %926 = vrot.lane.b32.xlu2 %v3106_v60, %s2692_s10  ;;  %638 = vst.msk [vmem:[#allocation3 + $0x98] sm:$0xff] %vm512_vm2, %v3110_v62  ;;  %v1048_v24 = vld [vmem:[#allocation2 + $0x98] sm:$0xff] }
 0x120   : > { %765 = vrot.lane.b32.xlu1 %v3116_v0, %s2691_s9  ;;  %632 = vst.msk [vmem:[#allocation3 + $0x68] sm:$0xff] %vm512_vm2, %v1048_v24 }
 0x121   : > { %v1106_v1 = vpop.permute.xlu0 %1105  ;;  %v1299_v2 = vpop.permute.xlu2 %1298 }
 0x122   : > { %v754_v3 = vpop.permute.xlu1 %753 }
 0x123   : > { %831 = vst.msk [vmem:[#allocation3 + $0x98] sm:$0xff] %vm811_vm5, %v754_v3  ;;  %v3238_v3 = vld [vmem:[#allocation2 + $0x92] sm:$0xff] }
 0x124   : > { %1024 = vst.msk [vmem:[#allocation3 + $0x98] sm:$0xff] %vm1004_vm6, %v947_v56  ;;  %v1049_v56 = vld [vmem:[#allocation2 + $0xa8] sm:$0xff] }
 0x125   : > { %633 = vst.msk [vmem:[#allocation3 + $0x70] sm:$0xff] %vm512_vm2, %v1049_v56 }
 0x127   : > { %769 = vrot.lane.b32.xlu0 %v3125_v4, %s2691_s9  ;;  %1115 = vrot.lane.b32.xlu2 %v3029_v12, %s2694_s14  ;;  %v1047_v12 = vld [vmem:[#allocation2 + $0x90] sm:$0xff] }
 0x128   : > { %924 = vrot.lane.b32.xlu1 %v3131_v5, %s2692_s10  ;;  %631 = vst.msk [vmem:[#allocation3 + $0x60] sm:$0xff] %vm512_vm2, %v1047_v12 }
 0x129   : > { %v758_v6 = vpop.permute.xlu0 %757  ;;  %v951_v8 = vpop.permute.xlu2 %950 }
 0x12a   : > { %833 = vst.msk [vmem:[#allocation3 + $0xa8] sm:$0xff] %vm811_vm5, %v758_v6  ;;  %v722_v10 = vpop.permute.xlu1 %721 }
 0x12b   : > { %1026 = vst.msk [vmem:[#allocation3 + $0xa8] sm:$0xff] %vm1004_vm6, %v951_v8  ;;  %v873_v8 = vld [vmem:[#allocation2 + $0x15a] sm:$0xff] }
 0x12c   : > { %815 = vst.msk [vmem:[#allocation3 + $0x18] sm:$0xff] %vm811_vm5, %v722_v10 }
 0x12d   : > { %1008 = vst.msk [vmem:[#allocation3 + $0x18] sm:$0xff] %vm1004_vm6, %v3060_v32  ;;  %v471_v32 = vpop.f32.mrf.mxu3 }
 0x12e   : > { %v472_v33 = vadd.f32 %v2879_v36, %v471_v32 }
 0x12f   : > { %928 = vrot.lane.b32.xlu0 %v3140_v14, %s2692_s10  ;;  %767 = vrot.lane.b32.xlu2 %v3142_v15, %s2691_s9 }
 0x130   : > { %1149 = vrot.lane.b32.xlu1 %v3075_v45, %s2694_s14  ;;  %v509_v35 = vmax.f32 %v472_v33, 0.0  ;;  %v3271_v33 = vld [vmem:[#allocation2 + $0xc8] sm:$0xff] }
 0x131   : > { %v917_v17 = vpop.permute.xlu0 %916  ;;  %v1140_v19 = vpop.permute.xlu2 %1139  ;;  %636 = vst.msk [vmem:[#allocation3 + $0x88] sm:$0xff] %vm512_vm2, %v3271_v33 }
 0x132   : > { %1009 = vst.msk [vmem:[#allocation3 + $0x20] sm:$0xff] %vm1004_vm6, %v917_v17  ;;  %v913_v20 = vpop.permute.xlu1 %912 }
 0x133   : > { %1217 = vst.msk [vmem:[#allocation3 + $0x98] sm:$0xff] %vm1197_vm7, %v1140_v19 }
 0x134   : > { %1007 = vst.msk [vmem:[#allocation3 + $0x10] sm:$0xff] %vm1004_vm6, %v913_v20 }
 0x135   : > { %1200 = vst.msk [vmem:[#allocation3 + $0x10] sm:$0xff] %vm1197_vm7, %v1106_v1  ;;  %v474_v61 = vpop.f32.mrf.mxu3 }
 0x136   : > { %1393 = vst.msk [vmem:[#allocation3 + $0x10] sm:$0xff] %vm1390_vm8, %v1299_v2  ;;  %v475_v1 = vadd.f32 %v2879_v36, %v474_v61  ;;  %v1051_v2 = vld [vmem:[#allocation2 + $0xc0] sm:$0xff] }
 0x137   : > { %1153 = vrot.lane.b32.xlu0 %v1063_v55, %s2694_s14  ;;  %962 = vrot.lane.b32.xlu2 %v3158_v22, %s2692_s10  ;;  %584 = vst.msk [vmem:[#allocation2 + $0x171] sm:$0xff] %vm512_vm2, %v509_v35  ;;  %v3221_v55 = vld [vmem:[#allocation2 + $0x151] sm:$0xff] }
 0x138   : > { %735 = vrot.lane.b32.xlu1 %v3166_v26, %s2691_s9  ;;  %635 = vst.msk [vmem:[#allocation3 + $0x80] sm:$0xff] %vm512_vm2, %v1051_v2  ;;  %v510_v6 = vmax.f32 %v475_v1, 0.0  ;;  %v3273_v35 = vld [vmem:[#allocation2 + $0xb1] sm:$0xff]  ;;  %v3310_v1 = vld [vmem:[#allocation2 + $0xd9] sm:$0xff] }
 0x139   : > { %v1301_v27 = vpop.permute.xlu0 %1300  ;;  %v726_v28 = vpop.permute.xlu2 %725 }
 0x13a   : > { %817 = vst.msk [vmem:[#allocation3 + $0x28] sm:$0xff] %vm811_vm5, %v726_v28  ;;  %v1297_v29 = vpop.permute.xlu1 %1296  ;;  %v3265_v28 = vld [vmem:[#allocation2 + $0x99] sm:$0xff] }
 0x13b   : > { %1392 = vst.msk [vmem:[#allocation3 + $0x8] sm:$0xff] %vm1390_vm8, %v1297_v29 }
 0x13c   : > { %585 = vst.msk [vmem:[#allocation2 + $0x181] sm:$0xff] %vm512_vm2, %v510_v6 }
 0x13d   : > { %v477_v20 = vpop.f32.mrf.mxu3 }
 0x13e   : > { %v875_v19 = vld [vmem:[#allocation2 + $0x172] sm:$0xff]  ;;  %v478_v21 = vadd.f32 %v2879_v36, %v477_v20  ;;  %v3260_v36 = vld [vmem:[#allocation2 + $0xa9] sm:$0xff] }
 0x13f   : > { %739 = vrot.lane.b32.xlu0 %v3174_v31, %s2691_s9  ;;  %1151 = vrot.lane.b32.xlu2 %v3081_v47, %s2694_s14  ;;  %v1066_v47 = vld [vmem:[#allocation2 + $0x170] sm:$0xff] }
 0x140   : > { %960 = vrot.lane.b32.xlu1 %v3181_v34, %s2692_s10  ;;  %650 = vst.msk [vmem:[#allocation3 + $0xf8] sm:$0xff] %vm512_vm2, %v1066_v47  ;;  %v511_v23 = vmax.f32 %v478_v21, 0.0 }
 0x141   : > { %v1142_v37 = vpop.permute.xlu0 %1141  ;;  %v1110_v38 = vpop.permute.xlu2 %1109 }
 0x142   : > { %1202 = vst.msk [vmem:[#allocation3 + $0x20] sm:$0xff] %vm1197_vm7, %v1110_v38  ;;  %v3187_v39 = vpop.permute.xlu1 %1137 }
 0x143   : > { %586 = vst.msk [vmem:[#allocation2 + $0x189] sm:$0xff] %vm512_vm2, %v511_v23 }
 0x147   : > { %964 = vrot.lane.b32.xlu0 %v3189_v40, %s2692_s10  ;;  %737 = vrot.lane.b32.xlu2 %v3191_v41, %s2691_s9 }
 0x148   : > { %930 = vrot.lane.b32.xlu1 %v3197_v42, %s2692_s10 }
 0x149   : > { %v728_v44 = vpop.permute.xlu0 %727  ;;  %v762_v45 = vpop.permute.xlu2 %761 }
 0x14a   : > { %818 = vst.msk [vmem:[#allocation3 + $0x30] sm:$0xff] %vm811_vm5, %v728_v44  ;;  %v949_v30 = vpop.permute.xlu1 %948 }
 0x14b   : > { %835 = vst.msk [vmem:[#allocation3 + $0xb8] sm:$0xff] %vm811_vm5, %v762_v45  ;;  %v3282_v45 = vld [vmem:[#allocation2 + $0xb2] sm:$0xff] }
 0x14c   : > { %1025 = vst.msk [vmem:[#allocation3 + $0xa0] sm:$0xff] %vm1004_vm6, %v949_v30  ;;  %v3287_v30 = vld [vmem:[#allocation2 + $0x171] sm:$0xff] }
 0x14d   : > { %1218 = vst.msk [vmem:[#allocation3 + $0xa0] sm:$0xff] %vm1197_vm7, %v1142_v37  ;;  %v874_v37 = vld [vmem:[#allocation2 + $0x16a] sm:$0xff] }
 0x14f   : > { %934 = vrot.lane.b32.xlu0 %v3205_v46, %s2692_s10  ;;  %1121 = vrot.lane.b32.xlu2 %v1047_v12, %s2694_s14 }
 0x150   : > { %1119 = vrot.lane.b32.xlu1 %v3084_v50, %s2694_s14  ;;  %v3225_v50 = vld [vmem:[#allocation2 + $0xb0] sm:$0xff] }
 0x151   : > { %v953_v48 = vpop.permute.xlu0 %952  ;;  %v921_v49 = vpop.permute.xlu2 %920  ;;  %634 = vst.msk [vmem:[#allocation3 + $0x78] sm:$0xff] %vm512_vm2, %v3225_v50 }
 0x152   : > { %1011 = vst.msk [vmem:[#allocation3 + $0x30] sm:$0xff] %vm1004_vm6, %v921_v49  ;;  %v919_v51 = vpop.permute.xlu1 %918 }
 0x153   : > { %1010 = vst.msk [vmem:[#allocation3 + $0x28] sm:$0xff] %vm1004_vm6, %v919_v51  ;;  %v1053_v51 = vld [vmem:[#allocation2 + $0xd8] sm:$0xff] }
 0x154   : > { %637 = vst.msk [vmem:[#allocation3 + $0x90] sm:$0xff] %vm512_vm2, %v1053_v51 }
 0x157   : > { %1123 = vrot.lane.b32.xlu0 %v1048_v24, %s2694_s14  ;;  %773 = vrot.lane.b32.xlu2 %v3216_v53, %s2691_s9 }
 0x158   : > { %771 = vrot.lane.b32.xlu1 %v3221_v55, %s2691_s9 }
 0x159   : > { %v3228_v57 = vpop.permute.xlu0 %922  ;;  %v1305_v58 = vpop.permute.xlu2 %1304 }
 0x15a   : > { %v1108_v59 = vpop.permute.xlu1 %1107 }
 0x15b   : > { %1201 = vst.msk [vmem:[#allocation3 + $0x18] sm:$0xff] %vm1197_vm7, %v1108_v59 }
 0x15c   : > { %1394 = vst.msk [vmem:[#allocation3 + $0x18] sm:$0xff] %vm1390_vm8, %v1301_v27 }
 0x15f   : > { %775 = vrot.lane.b32.xlu0 %v3234_v63, %s2691_s9  ;;  %932 = vrot.lane.b32.xlu2 %v3238_v3, %s2692_s10 }
 0x160   : > { %966 = vrot.lane.b32.xlu1 %v873_v8, %s2692_s10 }
 0x161   : > { %v1112_v10 = vpop.permute.xlu0 %1111  ;;  %v1146_v12 = vpop.permute.xlu2 %1145 }
 0x162   : > { %1203 = vst.msk [vmem:[#allocation3 + $0x28] sm:$0xff] %vm1197_vm7, %v1112_v10  ;;  %v760_v17 = vpop.permute.xlu1 %759 }
 0x163   : > { %1396 = vst.msk [vmem:[#allocation3 + $0x28] sm:$0xff] %vm1390_vm8, %v1305_v58  ;;  %v3303_v58 = vld [vmem:[#allocation2 + $0xaa] sm:$0xff] }
 0x164   : > { %834 = vst.msk [vmem:[#allocation3 + $0xb0] sm:$0xff] %vm811_vm5, %v760_v17  ;;  %v667_v17 = vld [vmem:[#allocation2 + $0xc1] sm:$0xff] }
 0x165   : > { %1027 = vst.msk [vmem:[#allocation3 + $0xb0] sm:$0xff] %vm1004_vm6, %v953_v48 }
 0x166   : > { %1220 = vst.msk [vmem:[#allocation3 + $0xb0] sm:$0xff] %vm1197_vm7, %v1146_v12  ;;  %v668_v12 = vld [vmem:[#allocation2 + $0xc9] sm:$0xff] }
 0x167   : > { %970 = vrot.lane.b32.xlu0 %v875_v19, %s2692_s10  ;;  %1157 = vrot.lane.b32.xlu2 %v1065_v43, %s2694_s14 }
 0x168   : > { %1155 = vrot.lane.b32.xlu1 %v3137_v13, %s2694_s14 }
 0x169   : > { %v764_v24 = vpop.permute.xlu0 %763  ;;  %v732_v25 = vpop.permute.xlu2 %731 }
 0x16a   : > { %836 = vst.msk [vmem:[#allocation3 + $0xc0] sm:$0xff] %vm811_vm5, %v764_v24  ;;  %v1303_v27 = vpop.permute.xlu1 %1302 }
 0x16b   : > { %820 = vst.msk [vmem:[#allocation3 + $0x40] sm:$0xff] %vm811_vm5, %v732_v25 }
 0x16c   : > { %1395 = vst.msk [vmem:[#allocation3 + $0x20] sm:$0xff] %vm1390_vm8, %v1303_v27  ;;  %v3339_v27 = vld [vmem:[#allocation2 + $0xda] sm:$0xff] }
 0x16f   : > { %1159 = vrot.lane.b32.xlu0 %v1066_v47, %s2694_s14  ;;  %743 = vrot.lane.b32.xlu2 %v3260_v36, %s2691_s9 }
 0x170   : > { %741 = vrot.lane.b32.xlu1 %v3265_v28, %s2691_s9 }
 0x171   : > { %v1307_v13 = vpop.permute.xlu0 %1306  ;;  %v957_v29 = vpop.permute.xlu2 %956 }
 0x172   : > { %1029 = vst.msk [vmem:[#allocation3 + $0xc0] sm:$0xff] %vm1004_vm6, %v957_v29  ;;  %v955_v32 = vpop.permute.xlu1 %954 }
 0x173   : > { %1028 = vst.msk [vmem:[#allocation3 + $0xb8] sm:$0xff] %vm1004_vm6, %v955_v32 }
 0x177   : > { %745 = vrot.lane.b32.xlu0 %v3273_v35, %s2691_s9  ;;  %968 = vrot.lane.b32.xlu2 %v874_v37, %s2692_s10 }
 0x178   : > { %1125 = vrot.lane.b32.xlu1 %v1049_v56, %s2694_s14  ;;  %v3295_v56 = vld [vmem:[#allocation2 + $0xc2] sm:$0xff] }
 0x179   : > { %v959_v38 = vpop.permute.xlu0 %958  ;;  %v927_v43 = vpop.permute.xlu2 %926 }
 0x17a   : > { %v1144_v44 = vpop.permute.xlu1 %1143 }
 0x17b   : > { %1219 = vst.msk [vmem:[#allocation3 + $0xa8] sm:$0xff] %vm1197_vm7, %v1144_v44 }
 0x17f   : > { %1129 = vrot.lane.b32.xlu0 %v1051_v2, %s2694_s14  ;;  %938 = vrot.lane.b32.xlu2 %v3282_v45, %s2692_s10  ;;  %v1068_v2 = vld [vmem:[#allocation2 + $0x188] sm:$0xff] }
 0x180   : > { %777 = vrot.lane.b32.xlu1 %v3287_v30, %s2691_s9 }
 0x181   : > { %v1148_v47 = vpop.permute.xlu0 %1147  ;;  %v1116_v48 = vpop.permute.xlu2 %1115 }
 0x182   : > { %1221 = vst.msk [vmem:[#allocation3 + $0xb8] sm:$0xff] %vm1197_vm7, %v1148_v47  ;;  %v730_v49 = vpop.permute.xlu1 %729 }
 0x183   : > { %819 = vst.msk [vmem:[#allocation3 + $0x38] sm:$0xff] %vm811_vm5, %v730_v49  ;;  %v1260_v49 = vld [vmem:[#allocation2 + $0x181] sm:$0xff] }
 0x184   : > { %1012 = vst.msk [vmem:[#allocation3 + $0x38] sm:$0xff] %vm1004_vm6, %v3228_v57 }
 0x185   : > { %1205 = vst.msk [vmem:[#allocation3 + $0x38] sm:$0xff] %vm1197_vm7, %v1116_v48 }
 0x187   : > { %940 = vrot.lane.b32.xlu0 %v3295_v56, %s2692_s10  ;;  %1127 = vrot.lane.b32.xlu2 %v3225_v50, %s2694_s14  ;;  %v1067_v50 = vld [vmem:[#allocation2 + $0x180] sm:$0xff] }
 0x188   : > { %936 = vrot.lane.b32.xlu1 %v3303_v58, %s2692_s10 }
 0x189   : > { %v734_v59 = vpop.permute.xlu0 %733  ;;  %v768_v61 = vpop.permute.xlu2 %767 }
 0x18a   : > { %821 = vst.msk [vmem:[#allocation3 + $0x48] sm:$0xff] %vm811_vm5, %v734_v59  ;;  %v1114_v57 = vpop.permute.xlu1 %1113  ;;  %v1424_v59 = vld [vmem:[#allocation2 + $0x22] sm:$0xff] }
 0x18b   : > { %1014 = vst.msk [vmem:[#allocation3 + $0x48] sm:$0xff] %vm1004_vm6, %v927_v43 }
 0x18c   : > { %838 = vst.msk [vmem:[#allocation3 + $0xd0] sm:$0xff] %vm811_vm5, %v768_v61 }
 0x18d   : > { %1204 = vst.msk [vmem:[#allocation3 + $0x30] sm:$0xff] %vm1197_vm7, %v1114_v57 }
 0x18e   : > { %1397 = vst.msk [vmem:[#allocation3 + $0x30] sm:$0xff] %vm1390_vm8, %v1307_v13 }
 0x18f   : > { %751 = vrot.lane.b32.xlu0 %v3310_v1, %s2691_s9  ;;  %1163 = vrot.lane.b32.xlu2 %v1068_v2, %s2694_s14 }
 0x190   : > { %1161 = vrot.lane.b32.xlu1 %v1067_v50, %s2694_s14  ;;  %v3428_v50 = vld [vmem:[#allocation2 + $0x3a] sm:$0xff] }
 0x191   : > { %v1118_v6 = vpop.permute.xlu0 %1117  ;;  %v963_v8 = vpop.permute.xlu2 %962 }
 0x192   : > { %v766_v10 = vpop.permute.xlu1 %765 }
 0x193   : > { %837 = vst.msk [vmem:[#allocation3 + $0xc8] sm:$0xff] %vm811_vm5, %v766_v10 }
 0x194   : > { %1030 = vst.msk [vmem:[#allocation3 + $0xc8] sm:$0xff] %vm1004_vm6, %v959_v38 }
 0x197   : > { %1135 = vrot.lane.b32.xlu0 %v3110_v62, %s2694_s14  ;;  %749 = vrot.lane.b32.xlu2 %v668_v12, %s2691_s9  ;;  %v3333_v62 = vld [vmem:[#allocation2 + $0xca] sm:$0xff] }
 0x198   : > { %747 = vrot.lane.b32.xlu1 %v667_v17, %s2691_s9 }
 0x199   : > { %v770_v19 = vpop.permute.xlu0 %769  ;;  %v1152_v20 = vpop.permute.xlu2 %1151 }
 0x19a   : > { %839 = vst.msk [vmem:[#allocation3 + $0xd8] sm:$0xff] %vm811_vm5, %v770_v19  ;;  %v925_v21 = vpop.permute.xlu1 %924 }
 0x19b   : > { %1032 = vst.msk [vmem:[#allocation3 + $0xd8] sm:$0xff] %vm1004_vm6, %v963_v8 }
 0x19c   : > { %1223 = vst.msk [vmem:[#allocation3 + $0xc8] sm:$0xff] %vm1197_vm7, %v1152_v20 }
 0x19d   : > { %1013 = vst.msk [vmem:[#allocation3 + $0x40] sm:$0xff] %vm1004_vm6, %v925_v21 }
 0x19e   : > { %1206 = vst.msk [vmem:[#allocation3 + $0x40] sm:$0xff] %vm1197_vm7, %v1118_v6 }
 0x19f   : > { %1312 = vrot.lane.b32.xlu0 %v3191_v41, %s2693_s13  ;;  %1310 = vrot.lane.b32.xlu2 %v3166_v26, %s2693_s13 }
 0x1a0   : > { %942 = vrot.lane.b32.xlu1 %v3333_v62, %s2692_s10 }
 0x1a1   : > { %v929_v23 = vpop.permute.xlu0 %928  ;;  %v738_v24 = vpop.permute.xlu2 %737 }
 0x1a2   : > { %823 = vst.msk [vmem:[#allocation3 + $0x58] sm:$0xff] %vm811_vm5, %v738_v24  ;;  %v1150_v25 = vpop.permute.xlu1 %1149  ;;  %v1441_v24 = vld [vmem:[#allocation2 + $0xf2] sm:$0xff] }
 0x1a3   : > { %1222 = vst.msk [vmem:[#allocation3 + $0xc0] sm:$0xff] %vm1197_vm7, %v1150_v25 }
 0x1a7   : > { %1318 = vrot.lane.b32.xlu0 %v3260_v36, %s2693_s13  ;;  %944 = vrot.lane.b32.xlu2 %v3339_v27, %s2692_s10 }
 0x1a8   : > { %1131 = vrot.lane.b32.xlu1 %v3271_v33, %s2694_s14 }
 0x1a9   : > { %v1154_v26 = vpop.permute.xlu0 %1153  ;;  %v1122_v41 = vpop.permute.xlu2 %1121 }
 0x1aa   : > { %v736_v13 = vpop.permute.xlu1 %735 }
 0x1ab   : > { %822 = vst.msk [vmem:[#allocation3 + $0x50] sm:$0xff] %vm811_vm5, %v736_v13 }
 0x1ac   : > { %1015 = vst.msk [vmem:[#allocation3 + $0x50] sm:$0xff] %vm1004_vm6, %v929_v23 }
 0x1ad   : > { %1208 = vst.msk [vmem:[#allocation3 + $0x50] sm:$0xff] %vm1197_vm7, %v1122_v41 }
 0x1af   : > { %1324 = vrot.lane.b32.xlu0 %v668_v12, %s2693_s13  ;;  %1133 = vrot.lane.b32.xlu2 %v1053_v51, %s2694_s14 }
 0x1b0   : > { %1308 = vrot.lane.b32.xlu1 %v3088_v52, %s2693_s13 }
 0x1b1   : > { %v740_v36 = vpop.permute.xlu0 %739  ;;  %v774_v29 = vpop.permute.xlu2 %773 }
 0x1b2   : > { %824 = vst.msk [vmem:[#allocation3 + $0x60] sm:$0xff] %vm811_vm5, %v740_v36  ;;  %v961_v32 = vpop.permute.xlu1 %960 }
 0x1b3   : > { %841 = vst.msk [vmem:[#allocation3 + $0xe8] sm:$0xff] %vm811_vm5, %v774_v29  ;;  %v1810_v29 = vld [vmem:[#allocation2 + $0x31] sm:$0xff] }
 0x1b4   : > { %1031 = vst.msk [vmem:[#allocation3 + $0xd0] sm:$0xff] %vm1004_vm6, %v961_v32  ;;  %v3509_v32 = vld [vmem:[#allocation2 + $0x12a] sm:$0xff] }
 0x1b5   : > { %1224 = vst.msk [vmem:[#allocation3 + $0xd0] sm:$0xff] %vm1197_vm7, %v1154_v26  ;;  %v3494_v26 = vld [vmem:[#allocation2 + $0x112] sm:$0xff] }
 0x1b7   : > { %1330 = vrot.lane.b32.xlu0 %v2934_v11, %s2693_s13  ;;  %1316 = vrot.lane.b32.xlu2 %v3265_v28, %s2693_s13 }
 0x1b8   : > { %1314 = vrot.lane.b32.xlu1 %v3174_v31, %s2693_s13  ;;  %v1247_v31 = vld [vmem:[#allocation2 + $0xe1] sm:$0xff] }
 0x1b9   : > { %v965_v52 = vpop.permute.xlu0 %964  ;;  %v933_v33 = vpop.permute.xlu2 %932 }
 0x1ba   : > { %1017 = vst.msk [vmem:[#allocation3 + $0x60] sm:$0xff] %vm1004_vm6, %v933_v33  ;;  %v931_v37 = vpop.permute.xlu1 %930 }
 0x1bb   : > { %1016 = vst.msk [vmem:[#allocation3 + $0x58] sm:$0xff] %vm1004_vm6, %v931_v37 }
 0x1bf   : > { %1336 = vrot.lane.b32.xlu0 %v3016_v7, %s2693_s13  ;;  %1322 = vrot.lane.b32.xlu2 %v667_v17, %s2693_s13 }
 0x1c0   : > { %1320 = vrot.lane.b32.xlu1 %v3273_v35, %s2693_s13 }
 0x1c1   : > { %v935_v11 = vpop.permute.xlu0 %934  ;;  %v1158_v28 = vpop.permute.xlu2 %1157 }
 0x1c2   : > { %v1120_v38 = vpop.permute.xlu1 %1119 }
 0x1c3   : > { %1207 = vst.msk [vmem:[#allocation3 + $0x48] sm:$0xff] %vm1197_vm7, %v1120_v38 }
 0x1c7   : > { %1342 = vrot.lane.b32.xlu0 %v3142_v15, %s2693_s13  ;;  %1328 = vrot.lane.b32.xlu2 %v1247_v31, %s2693_s13  ;;  %v3386_v15 = vld [vmem:[#allocation2 + $0xf9] sm:$0xff] }
 0x1c8   : > { %1326 = vrot.lane.b32.xlu1 %v3310_v1, %s2693_s13  ;;  %v1423_v1 = vld [vmem:[#allocation2 + $0x1a] sm:$0xff] }
 0x1c9   : > { %v1124_v7 = vpop.permute.xlu0 %1123  ;;  %v744_v43 = vpop.permute.xlu2 %743  ;;  %v1811_v31 = vld [vmem:[#allocation2 + $0x39] sm:$0xff] }
 0x1ca   : > { %1209 = vst.msk [vmem:[#allocation3 + $0x58] sm:$0xff] %vm1197_vm7, %v1124_v7  ;;  %v772_v44 = vpop.permute.xlu1 %771  ;;  %v1617_v7 = vld [vmem:[#allocation2 + $0x30] sm:$0xff] }
 0x1cb   : > { %826 = vst.msk [vmem:[#allocation3 + $0x70] sm:$0xff] %vm811_vm5, %v744_v43 }
 0x1cc   : > { %840 = vst.msk [vmem:[#allocation3 + $0xe0] sm:$0xff] %vm811_vm5, %v772_v44 }
 0x1cd   : > { %1033 = vst.msk [vmem:[#allocation3 + $0xe0] sm:$0xff] %vm1004_vm6, %v965_v52 }
 0x1ce   : > { %1226 = vst.msk [vmem:[#allocation3 + $0xe0] sm:$0xff] %vm1197_vm7, %v1158_v28 }
 0x1cf   : > { %1348 = vrot.lane.b32.xlu0 %v3216_v53, %s2693_s13  ;;  %1334 = vrot.lane.b32.xlu2 %v3023_v9, %s2693_s13 }
 0x1d0   : > { %1332 = vrot.lane.b32.xlu1 %v3386_v15, %s2693_s13 }
 0x1d1   : > { %v776_v35 = vpop.permute.xlu0 %775  ;;  %v969_v47 = vpop.permute.xlu2 %968 }
 0x1d2   : > { %842 = vst.msk [vmem:[#allocation3 + $0xf0] sm:$0xff] %vm811_vm5, %v776_v35  ;;  %v967_v48 = vpop.permute.xlu1 %966  ;;  %v1634_v35 = vld [vmem:[#allocation2 + $0xf8] sm:$0xff] }
 0x1d3   : > { %1035 = vst.msk [vmem:[#allocation3 + $0xf0] sm:$0xff] %vm1004_vm6, %v969_v47 }
 0x1d4   : > { %1034 = vst.msk [vmem:[#allocation3 + $0xe8] sm:$0xff] %vm1004_vm6, %v967_v48 }
 0x1d7   : > { %1354 = vrot.lane.b32.xlu0 %v1260_v49, %s2693_s13  ;;  %1340 = vrot.lane.b32.xlu2 %v3116_v0, %s2693_s13 }
 0x1d8   : > { %1338 = vrot.lane.b32.xlu1 %v3036_v16, %s2693_s13 }
 0x1d9   : > { %v971_v9 = vpop.permute.xlu0 %970  ;;  %v939_v53 = vpop.permute.xlu2 %938 }
 0x1da   : > { %v1156_v51 = vpop.permute.xlu1 %1155 }
 0x1db   : > { %1225 = vst.msk [vmem:[#allocation3 + $0xd8] sm:$0xff] %vm1197_vm7, %v1156_v51 }
 0x1df   : > { %1489 = vrot.lane.b32.xlu0 %v1424_v59, %s2695_s15  ;;  %1346 = vrot.lane.b32.xlu2 %v3221_v55, %s2693_s13 }
 0x1e0   : > { %1344 = vrot.lane.b32.xlu1 %v3125_v4, %s2693_s13 }
 0x1e1   : > { %v1160_v61 = vpop.permute.xlu0 %1159  ;;  %v1128_v0 = vpop.permute.xlu2 %1127 }
 0x1e2   : > { %1227 = vst.msk [vmem:[#allocation3 + $0xe8] sm:$0xff] %vm1197_vm7, %v1160_v61  ;;  %v742_v16 = vpop.permute.xlu1 %741 }
 0x1e3   : > { %825 = vst.msk [vmem:[#allocation3 + $0x68] sm:$0xff] %vm811_vm5, %v742_v16  ;;  %v1635_v16 = vld [vmem:[#allocation2 + $0x108] sm:$0xff] }
 0x1e4   : > { %1018 = vst.msk [vmem:[#allocation3 + $0x68] sm:$0xff] %vm1004_vm6, %v935_v11  ;;  %v1633_v11 = vld [vmem:[#allocation2 + $0xf0] sm:$0xff] }
 0x1e5   : > { %1211 = vst.msk [vmem:[#allocation3 + $0x68] sm:$0xff] %vm1197_vm7, %v1128_v0  ;;  %v1829_v0 = vld [vmem:[#allocation2 + $0x111] sm:$0xff] }
 0x1e7   : > { %1495 = vrot.lane.b32.xlu0 %v3038_v18, %s2695_s15  ;;  %1352 = vrot.lane.b32.xlu2 %v3287_v30, %s2693_s13  ;;  %v3420_v18 = vld [vmem:[#allocation2 + $0x189] sm:$0xff] }
 0x1e8   : > { %1350 = vrot.lane.b32.xlu1 %v3234_v63, %s2693_s13 }
 0x1e9   : > { %v746_v4 = vpop.permute.xlu0 %745  ;;  %v1164_v55 = vpop.permute.xlu2 %1163 }
 0x1ea   : > { %827 = vst.msk [vmem:[#allocation3 + $0x78] sm:$0xff] %vm811_vm5, %v746_v4  ;;  %v1126_v57 = vpop.permute.xlu1 %1125 }
 0x1eb   : > { %1020 = vst.msk [vmem:[#allocation3 + $0x78] sm:$0xff] %vm1004_vm6, %v939_v53  ;;  %v1618_v53 = vld [vmem:[#allocation2 + $0x38] sm:$0xff] }
 0x1ec   : > { %1210 = vst.msk [vmem:[#allocation3 + $0x60] sm:$0xff] %vm1197_vm7, %v1126_v57 }
 0x1ef   : > { %1501 = vrot.lane.b32.xlu0 %v3106_v60, %s2695_s15  ;;  %1487 = vrot.lane.b32.xlu2 %v1423_v1, %s2695_s15  ;;  %v3434_v60 = vld [vmem:[#allocation2 + $0x32] sm:$0xff] }
 0x1f0   : > { %1356 = vrot.lane.b32.xlu1 %v3420_v18, %s2693_s13  ;;  %v1813_v1 = vld [vmem:[#allocation2 + $0x51] sm:$0xff] }
 0x1f1   : > { %v1130_v63 = vpop.permute.xlu0 %1129  ;;  %v750_v30 = vpop.permute.xlu2 %749 }
 0x1f2   : > { %829 = vst.msk [vmem:[#allocation3 + $0x88] sm:$0xff] %vm811_vm5, %v750_v30  ;;  %v778_v2 = vpop.permute.xlu1 %777 }
 0x1f3   : > { %843 = vst.msk [vmem:[#allocation3 + $0xf8] sm:$0xff] %vm811_vm5, %v778_v2 }
 0x1f4   : > { %1036 = vst.msk [vmem:[#allocation3 + $0xf8] sm:$0xff] %vm1004_vm6, %v971_v9  ;;  %v1812_v9 = vld [vmem:[#allocation2 + $0x49] sm:$0xff] }
 0x1f5   : > { %1229 = vst.msk [vmem:[#allocation3 + $0xf8] sm:$0xff] %vm1197_vm7, %v1164_v55 }
 0x1f7   : > { %1507 = vrot.lane.b32.xlu0 %v3238_v3, %s2695_s15  ;;  %1493 = vrot.lane.b32.xlu2 %v3428_v50, %s2695_s15  ;;  %v3445_v3 = vld [vmem:[#allocation2 + $0x52] sm:$0xff] }
 0x1f8   : > { %1491 = vrot.lane.b32.xlu1 %v3434_v60, %s2695_s15 }
 0x1f9   : > { %v941_v6 = vpop.permute.xlu0 %940  ;;  %v1311_v8 = vpop.permute.xlu2 %1310 }
 0x1fa   : > { %1399 = vst.msk [vmem:[#allocation3 + $0x40] sm:$0xff] %vm1390_vm8, %v1311_v8  ;;  %v937_v10 = vpop.permute.xlu1 %936  ;;  %v1636_v8 = vld [vmem:[#allocation2 + $0x110] sm:$0xff] }
 0x1fb   : > { %1019 = vst.msk [vmem:[#allocation3 + $0x70] sm:$0xff] %vm1004_vm6, %v937_v10 }
 0x1fc   : > { %1212 = vst.msk [vmem:[#allocation3 + $0x70] sm:$0xff] %vm1197_vm7, %v1130_v63  ;;  %v1619_v63 = vld [vmem:[#allocation2 + $0x48] sm:$0xff] }
 0x1ff   : > { %1513 = vrot.lane.b32.xlu0 %v3282_v45, %s2695_s15  ;;  %1499 = vrot.lane.b32.xlu2 %v3131_v5, %s2695_s15 }
 0x200   : > { %1497 = vrot.lane.b32.xlu1 %v3445_v3, %s2695_s15 }
 0x201   : > { %v752_v12 = vpop.permute.xlu0 %751  ;;  %v945_v17 = vpop.permute.xlu2 %944 }
 0x202   : > { %830 = vst.msk [vmem:[#allocation3 + $0x90] sm:$0xff] %vm811_vm5, %v752_v12  ;;  %v1162_v19 = vpop.permute.xlu1 %1161 }
 0x203   : > { %1023 = vst.msk [vmem:[#allocation3 + $0x90] sm:$0xff] %vm1004_vm6, %v945_v17 }
 0x204   : > { %1216 = vst.msk [vmem:[#allocation3 + $0x90] sm:$0xff] %vm1197_vm7, %v3187_v39  ;;  %v3463_v39 = vld [vmem:[#allocation2 + $0xfa] sm:$0xff] }
 0x205   : > { %1228 = vst.msk [vmem:[#allocation3 + $0xf0] sm:$0xff] %vm1197_vm7, %v1162_v19  ;;  %v1814_v19 = vld [vmem:[#allocation2 + $0x61] sm:$0xff] }
 0x207   : > { %1519 = vrot.lane.b32.xlu0 %v3339_v27, %s2695_s15  ;;  %1505 = vrot.lane.b32.xlu2 %v3197_v42, %s2695_s15  ;;  %v1826_v27 = vld [vmem:[#allocation2 + $0xf1] sm:$0xff] }
 0x208   : > { %1503 = vrot.lane.b32.xlu1 %v3140_v14, %s2695_s15 }
 0x209   : > { %v1136_v5 = vpop.permute.xlu0 %1135  ;;  %v1134_v45 = vpop.permute.xlu2 %1133 }
 0x20a   : > { %v748_v20 = vpop.permute.xlu1 %747 }
 0x20b   : > { %828 = vst.msk [vmem:[#allocation3 + $0x80] sm:$0xff] %vm811_vm5, %v748_v20 }
 0x20c   : > { %1021 = vst.msk [vmem:[#allocation3 + $0x80] sm:$0xff] %vm1004_vm6, %v941_v6  ;;  %v2005_v6 = vld [vmem:[#allocation2 + $0x4a] sm:$0xff] }
 0x20d   : > { %1214 = vst.msk [vmem:[#allocation3 + $0x80] sm:$0xff] %vm1197_vm7, %v1134_v45 }
 0x20f   : > { %1525 = vrot.lane.b32.xlu0 %v3463_v39, %s2695_s15  ;;  %1511 = vrot.lane.b32.xlu2 %v3303_v58, %s2695_s15 }
 0x210   : > { %1509 = vrot.lane.b32.xlu1 %v3205_v46, %s2695_s15 }
 0x211   : > { %v1313_v14 = vpop.permute.xlu0 %1312  ;;  %v1317_v42 = vpop.permute.xlu2 %1316 }
 0x212   : > { %1400 = vst.msk [vmem:[#allocation3 + $0x48] sm:$0xff] %vm1390_vm8, %v1313_v14  ;;  %v943_v21 = vpop.permute.xlu1 %942  ;;  %v1831_v14 = vld [vmem:[#allocation2 + $0x129] sm:$0xff] }
 0x213   : > { %1402 = vst.msk [vmem:[#allocation3 + $0x58] sm:$0xff] %vm1390_vm8, %v1317_v42  ;;  %v1637_v42 = vld [vmem:[#allocation2 + $0x120] sm:$0xff] }
 0x214   : > { %1022 = vst.msk [vmem:[#allocation3 + $0x88] sm:$0xff] %vm1004_vm6, %v943_v21 }
 0x215   : > { %1215 = vst.msk [vmem:[#allocation3 + $0x88] sm:$0xff] %vm1197_vm7, %v1136_v5  ;;  %v1620_v5 = vld [vmem:[#allocation2 + $0x50] sm:$0xff] }
 0x217   : > { %1531 = vrot.lane.b32.xlu0 %v3094_v54, %s2695_s15  ;;  %1517 = vrot.lane.b32.xlu2 %v3333_v62, %s2695_s15  ;;  %v3487_v54 = vld [vmem:[#allocation2 + $0xe2] sm:$0xff] }
 0x218   : > { %1515 = vrot.lane.b32.xlu1 %v3295_v56, %s2695_s15 }
 0x219   : > { %v1319_v46 = vpop.permute.xlu0 %1318  ;;  %v1323_v58 = vpop.permute.xlu2 %1322 }
 0x21a   : > { %1403 = vst.msk [vmem:[#allocation3 + $0x60] sm:$0xff] %vm1390_vm8, %v1319_v46  ;;  %v1132_v23 = vpop.permute.xlu1 %1131 }
 0x21b   : > { %1405 = vst.msk [vmem:[#allocation3 + $0x70] sm:$0xff] %vm1390_vm8, %v1323_v58 }
 0x21c   : > { %1213 = vst.msk [vmem:[#allocation3 + $0x78] sm:$0xff] %vm1197_vm7, %v1132_v23  ;;  %v2236_v23 = vld [vmem:[%s3939_s3 + $0x40] sm:$0xff] }
 0x21d   : > { %2345 = vmatpush.msra.mxu1 %v2236_v23  ;;  %2654 = vmatpush.msra.mxu2 %v2236_v23 }
 0x21f   : > { %1537 = vrot.lane.b32.xlu0 %v3158_v22, %s2695_s15  ;;  %1523 = vrot.lane.b32.xlu2 %v1441_v24, %s2695_s15  ;;  %v3499_v22 = vld [vmem:[#allocation2 + $0x10a] sm:$0xff] }
 0x220   : > { %1521 = vrot.lane.b32.xlu1 %v3487_v54, %s2695_s15 }
 0x221   : > { %v1325_v56 = vpop.permute.xlu0 %1324  ;;  %v1329_v62 = vpop.permute.xlu2 %1328 }
 0x222   : > { %1406 = vst.msk [vmem:[#allocation3 + $0x78] sm:$0xff] %vm1390_vm8, %v1325_v56  ;;  %v1309_v25 = vpop.permute.xlu1 %1308  ;;  %v1621_v56 = vld [vmem:[#allocation2 + $0x60] sm:$0xff] }
 0x223   : > { %1408 = vst.msk [vmem:[#allocation3 + $0x88] sm:$0xff] %vm1390_vm8, %v1329_v62  ;;  %v2023_v62 = vld [vmem:[#allocation2 + $0x122] sm:$0xff] }
 0x224   : > { %1398 = vst.msk [vmem:[#allocation3 + $0x38] sm:$0xff] %vm1390_vm8, %v1309_v25  ;;  %v2234_v25 = vld [vmem:[%s3939_s3 + $0x30] sm:$0xff] }
 0x227   : > { %1906 = vrot.lane.b32.xlu0 %v1826_v27, %s2696_s16  ;;  %1529 = vrot.lane.b32.xlu2 %v3494_v26, %s2695_s15 }
 0x228   : > { %1527 = vrot.lane.b32.xlu1 %v3499_v22, %s2695_s15 }
 0x229   : > { %v1331_v41 = vpop.permute.xlu0 %1330  ;;  %v1335_v13 = vpop.permute.xlu2 %1334 }
 0x22a   : > { %1409 = vst.msk [vmem:[#allocation3 + $0x90] sm:$0xff] %vm1390_vm8, %v1331_v41  ;;  %v1315_v36 = vpop.permute.xlu1 %1314 }
 0x22b   : > { %1411 = vst.msk [vmem:[#allocation3 + $0xa0] sm:$0xff] %vm1390_vm8, %v1335_v13  ;;  %v2232_v13 = vld [vmem:[%s3939_s3 + $0x20] sm:$0xff] }
 0x22c   : > { %1401 = vst.msk [vmem:[#allocation3 + $0x50] sm:$0xff] %vm1390_vm8, %v1315_v36  ;;  %v2231_v36 = vld [vmem:[%s3939_s3 + $0x18] sm:$0xff] }
 0x22f   : > { %1874 = vrot.lane.b32.xlu0 %v1810_v29, %s2696_s16  ;;  %1535 = vrot.lane.b32.xlu2 %v3181_v34, %s2695_s15  ;;  %v1832_v29 = vld [vmem:[#allocation2 + $0x139] sm:$0xff] }
 0x230   : > { %1533 = vrot.lane.b32.xlu1 %v3509_v32, %s2695_s15 }
 0x231   : > { %v1337_v52 = vpop.permute.xlu0 %1336  ;;  %v1341_v33 = vpop.permute.xlu2 %1340 }
 0x232   : > { %1412 = vst.msk [vmem:[#allocation3 + $0xa8] sm:$0xff] %vm1390_vm8, %v1337_v52  ;;  %v1321_v37 = vpop.permute.xlu1 %1320  ;;  %v2007_v52 = vld [vmem:[#allocation2 + $0x62] sm:$0xff] }
 0x233   : > { %1414 = vst.msk [vmem:[#allocation3 + $0xb8] sm:$0xff] %vm1390_vm8, %v1341_v33  ;;  %v1638_v33 = vld [vmem:[#allocation2 + $0x128] sm:$0xff] }
 0x234   : > { %1404 = vst.msk [vmem:[#allocation3 + $0x68] sm:$0xff] %vm1390_vm8, %v1321_v37  ;;  %v2230_v37 = vld [vmem:[%s3939_s3 + $0x10] sm:$0xff] }
 0x237   : > { %1908 = vrot.lane.b32.xlu0 %v3386_v15, %s2696_s16  ;;  %1713 = vrot.lane.b32.xlu2 %v1633_v11, %s2697_s17  ;;  %v1828_v15 = vld [vmem:[#allocation2 + $0x109] sm:$0xff] }
 0x238   : > { %1539 = vrot.lane.b32.xlu1 %v3189_v40, %s2695_s15 }
 0x239   : > { %v1343_v34 = vpop.permute.xlu0 %1342  ;;  %v1347_v28 = vpop.permute.xlu2 %1346 }
 0x23a   : > { %1415 = vst.msk [vmem:[#allocation3 + $0xc0] sm:$0xff] %vm1390_vm8, %v1343_v34  ;;  %v1327_v38 = vpop.permute.xlu1 %1326 }
 0x23b   : > { %1417 = vst.msk [vmem:[#allocation3 + $0xd0] sm:$0xff] %vm1390_vm8, %v1347_v28  ;;  %v2229_v28 = vld [vmem:[%s3939_s3 + $0x8] sm:$0xff] }
 0x23c   : > { %1407 = vst.msk [vmem:[#allocation3 + $0x80] sm:$0xff] %vm1390_vm8, %v1327_v38 }
 0x23f   : > { %1876 = vrot.lane.b32.xlu0 %v1811_v31, %s2696_s16  ;;  %1681 = vrot.lane.b32.xlu2 %v1617_v7, %s2697_s17  ;;  %v2228_v31 = vld [vmem:[%s3939_s3] sm:$0xff] }
 0x240   : > { %2099 = vrot.lane.b32.xlu1 %v1441_v24, %s2698_s20  ;;  %v1815_v24 = vld [vmem:[#allocation2 + $0x69] sm:$0xff]  ;;  %v1816_v7 = vld [vmem:[#allocation2 + $0x79] sm:$0xff] }
 0x241   : > { %v1349_v43 = vpop.permute.xlu0 %1348  ;;  %v1353_v40 = vpop.permute.xlu2 %1352 }
 0x242   : > { %1418 = vst.msk [vmem:[#allocation3 + $0xd8] sm:$0xff] %vm1390_vm8, %v1349_v43  ;;  %v1333_v44 = vpop.permute.xlu1 %1332  ;;  %v1622_v43 = vld [vmem:[#allocation2 + $0x68] sm:$0xff] }
 0x243   : > { %1420 = vst.msk [vmem:[#allocation3 + $0xe8] sm:$0xff] %vm1390_vm8, %v1353_v40 }
 0x244   : > { %1410 = vst.msk [vmem:[#allocation3 + $0x98] sm:$0xff] %vm1390_vm8, %v1333_v44 }
 0x247   : > { %1910 = vrot.lane.b32.xlu0 %v1828_v15, %s2696_s16  ;;  %2067 = vrot.lane.b32.xlu2 %v3434_v60, %s2698_s20  ;;  %v1830_v60 = vld [vmem:[#allocation2 + $0x121] sm:$0xff] }
 0x248   : > { %1715 = vrot.lane.b32.xlu1 %v1634_v35, %s2697_s17  ;;  %v1833_v35 = vld [vmem:[#allocation2 + $0x141] sm:$0xff] }
 0x249   : > { %v1355_v47 = vpop.permute.xlu0 %1354  ;;  %v1488_v48 = vpop.permute.xlu2 %1487 }
 0x24a   : > { %1421 = vst.msk [vmem:[#allocation3 + $0xf0] sm:$0xff] %vm1390_vm8, %v1355_v47  ;;  %v1339_v49 = vpop.permute.xlu1 %1338  ;;  %v2008_v47 = vld [vmem:[#allocation2 + $0x6a] sm:$0xff] }
 0x24b   : > { %1584 = vst.msk [vmem:[#allocation3] sm:$0xff] %vm1583_vm9, %v1488_v48  ;;  %v1639_v48 = vld [vmem:[#allocation2 + $0x138] sm:$0xff] }
 0x24c   : > { %1413 = vst.msk [vmem:[#allocation3 + $0xb0] sm:$0xff] %vm1390_vm8, %v1339_v49 }
 0x24f   : > { %1878 = vrot.lane.b32.xlu0 %v1812_v9, %s2696_s16  ;;  %1683 = vrot.lane.b32.xlu2 %v1618_v53, %s2697_s17  ;;  %v1817_v53 = vld [vmem:[#allocation2 + $0x81] sm:$0xff] }
 0x250   : > { %2101 = vrot.lane.b32.xlu1 %v3463_v39, %s2698_s20 }
 0x251   : > { %v1490_v51 = vpop.permute.xlu0 %1489  ;;  %v1494_v59 = vpop.permute.xlu2 %1493 }
 0x252   : > { %1585 = vst.msk [vmem:[#allocation3 + $0x8] sm:$0xff] %vm1583_vm9, %v1490_v51  ;;  %v1345_v61 = vpop.permute.xlu1 %1344  ;;  %v1623_v51 = vld [vmem:[#allocation2 + $0x78] sm:$0xff] }
 0x253   : > { %1587 = vst.msk [vmem:[#allocation3 + $0x18] sm:$0xff] %vm1583_vm9, %v1494_v59  ;;  %v2025_v59 = vld [vmem:[#allocation2 + $0x13a] sm:$0xff] }
 0x254   : > { %1416 = vst.msk [vmem:[#allocation3 + $0xc8] sm:$0xff] %vm1390_vm8, %v1345_v61 }
 0x257   : > { %1912 = vrot.lane.b32.xlu0 %v1829_v0, %s2696_s16  ;;  %2069 = vrot.lane.b32.xlu2 %v3428_v50, %s2698_s20 }
 0x258   : > { %1717 = vrot.lane.b32.xlu1 %v1635_v16, %s2697_s17 }
 0x259   : > { %v1496_v4 = vpop.permute.xlu0 %1495  ;;  %v1500_v55 = vpop.permute.xlu2 %1499 }
 0x25a   : > { %1588 = vst.msk [vmem:[#allocation3 + $0x20] sm:$0xff] %vm1583_vm9, %v1496_v4  ;;  %v1351_v57 = vpop.permute.xlu1 %1350  ;;  %v1834_v4 = vld [vmem:[#allocation2 + $0x151] sm:$0xff] }
 0x25b   : > { %1590 = vst.msk [vmem:[#allocation3 + $0x30] sm:$0xff] %vm1583_vm9, %v1500_v55  ;;  %v2009_v55 = vld [vmem:[#allocation2 + $0x7a] sm:$0xff] }
 0x25c   : > { %1419 = vst.msk [vmem:[#allocation3 + $0xe0] sm:$0xff] %vm1390_vm8, %v1351_v57  ;;  %v1640_v57 = vld [vmem:[#allocation2 + $0x140] sm:$0xff] }
 0x25f   : > { %1880 = vrot.lane.b32.xlu0 %v1813_v1, %s2696_s16  ;;  %1685 = vrot.lane.b32.xlu2 %v1619_v63, %s2697_s17 }
 0x260   : > { %2103 = vrot.lane.b32.xlu1 %v3499_v22, %s2698_s20  ;;  %v2233_v22 = vld [vmem:[%s3939_s3 + $0x28] sm:$0xff] }
 0x261   : > { %v1502_v30 = vpop.permute.xlu0 %1501  ;;  %v1506_v2 = vpop.permute.xlu2 %1505 }
 0x262   : > { %1591 = vst.msk [vmem:[#allocation3 + $0x38] sm:$0xff] %vm1583_vm9, %v1502_v30  ;;  %v1357_v50 = vpop.permute.xlu1 %1356 }
 0x263   : > { %1593 = vst.msk [vmem:[#allocation3 + $0x48] sm:$0xff] %vm1583_vm9, %v1506_v2 }
 0x264   : > { %1422 = vst.msk [vmem:[#allocation3 + $0xf8] sm:$0xff] %vm1390_vm8, %v1357_v50  ;;  %v1818_v50 = vld [vmem:[#allocation2 + $0x91] sm:$0xff] }
 0x267   : > { %1914 = vrot.lane.b32.xlu0 %v1830_v60, %s2696_s16  ;;  %2071 = vrot.lane.b32.xlu2 %v2005_v6, %s2698_s20  ;;  %v1624_v60 = vld [vmem:[#allocation2 + $0x80] sm:$0xff] }
 0x268   : > { %1719 = vrot.lane.b32.xlu1 %v1636_v8, %s2697_s17  ;;  %v2026_v6 = vld [vmem:[#allocation2 + $0x142] sm:$0xff] }
 0x269   : > { %v1508_v10 = vpop.permute.xlu0 %1507  ;;  %v1512_v12 = vpop.permute.xlu2 %1511 }
 0x26a   : > { %1594 = vst.msk [vmem:[#allocation3 + $0x50] sm:$0xff] %vm1583_vm9, %v1508_v10  ;;  %v1492_v17 = vpop.permute.xlu1 %1491 }
 0x26b   : > { %1596 = vst.msk [vmem:[#allocation3 + $0x60] sm:$0xff] %vm1583_vm9, %v1512_v12 }
 0x26c   : > { %1586 = vst.msk [vmem:[#allocation3 + $0x10] sm:$0xff] %vm1583_vm9, %v1492_v17  ;;  %v1835_v17 = vld [vmem:[#allocation2 + $0x159] sm:$0xff] }
 0x26f   : > { %1882 = vrot.lane.b32.xlu0 %v1814_v19, %s2696_s16  ;;  %1687 = vrot.lane.b32.xlu2 %v1620_v5, %s2697_s17  ;;  %v2010_v19 = vld [vmem:[#allocation2 + $0x82] sm:$0xff]  ;;  %v1641_v5 = vld [vmem:[#allocation2 + $0x150] sm:$0xff] }
 0x270   : > { %2105 = vrot.lane.b32.xlu1 %v3494_v26, %s2698_s20 }
 0x271   : > { %v1514_v45 = vpop.permute.xlu0 %1513  ;;  %v1518_v20 = vpop.permute.xlu2 %1517 }
 0x272   : > { %1597 = vst.msk [vmem:[#allocation3 + $0x68] sm:$0xff] %vm1583_vm9, %v1514_v45  ;;  %v1498_v39 = vpop.permute.xlu1 %1497 }
 0x273   : > { %1599 = vst.msk [vmem:[#allocation3 + $0x78] sm:$0xff] %vm1583_vm9, %v1518_v20 }
 0x274   : > { %1589 = vst.msk [vmem:[#allocation3 + $0x28] sm:$0xff] %vm1583_vm9, %v1498_v39 }
 0x277   : > { %1916 = vrot.lane.b32.xlu0 %v1831_v14, %s2696_s16  ;;  %2073 = vrot.lane.b32.xlu2 %v3445_v3, %s2698_s20  ;;  %v2235_v3 = vld [vmem:[%s3939_s3 + $0x38] sm:$0xff] }
 0x278   : > { %1721 = vrot.lane.b32.xlu1 %v1637_v42, %s2697_s17  ;;  %2346 = vmatpush.msra.mxu1 %v2235_v3 }
 0x279   : > { %v1520_v21 = vpop.permute.xlu0 %1519  ;;  %v1524_v46 = vpop.permute.xlu2 %1523  ;;  %2655 = vmatpush.msra.mxu2 %v2235_v3 }
 0x27a   : > { %1600 = vst.msk [vmem:[#allocation3 + $0x80] sm:$0xff] %vm1583_vm9, %v1520_v21  ;;  %v1504_v58 = vpop.permute.xlu1 %1503  ;;  %2347 = vmatpush.msra.mxu1 %v2234_v25  ;;  %v1819_v21 = vld [vmem:[#allocation2 + $0x99] sm:$0xff] }
 0x27b   : > { %1602 = vst.msk [vmem:[#allocation3 + $0x90] sm:$0xff] %vm1583_vm9, %v1524_v46  ;;  %2656 = vmatpush.msra.mxu2 %v2234_v25  ;;  %v1625_v46 = vld [vmem:[#allocation2 + $0x90] sm:$0xff]  ;;  %v1642_v25 = vld [vmem:[#allocation2 + $0x158] sm:$0xff] }
 0x27c   : > { %1592 = vst.msk [vmem:[#allocation3 + $0x40] sm:$0xff] %vm1583_vm9, %v1504_v58  ;;  %2348 = vmatpush.msra.mxu1 %v2233_v22  ;;  %v2027_v58 = vld [vmem:[#allocation2 + $0x152] sm:$0xff] }
 0x27d   : > { %2657 = vmatpush.msra.mxu2 %v2233_v22 }
 0x27e   : > { %2349 = vmatpush.msra.mxu1 %v2232_v13 }
 0x27f   : > { %1884 = vrot.lane.b32.xlu0 %v1815_v24, %s2696_s16  ;;  %1689 = vrot.lane.b32.xlu2 %v1621_v56, %s2697_s17  ;;  %v1836_v56 = vld [vmem:[#allocation2 + $0x169] sm:$0xff] }
 0x280   : > { %2107 = vrot.lane.b32.xlu1 %v2023_v62, %s2698_s20  ;;  %2350 = vmatpush.msra.mxu1 %v2231_v36  ;;  %v2011_v62 = vld [vmem:[#allocation2 + $0x92] sm:$0xff] }
 0x281   : > { %v1526_v27 = vpop.permute.xlu0 %1525  ;;  %v1530_v26 = vpop.permute.xlu2 %1529  ;;  %2658 = vmatpush.msra.mxu2 %v2232_v13 }
 0x282   : > { %1603 = vst.msk [vmem:[#allocation3 + $0x98] sm:$0xff] %vm1583_vm9, %v1526_v27  ;;  %v1510_v41 = vpop.permute.xlu1 %1509  ;;  %2351 = vmatpush.msra.mxu1 %v2230_v37 }
 0x283   : > { %1605 = vst.msk [vmem:[#allocation3 + $0xa8] sm:$0xff] %vm1583_vm9, %v1530_v26  ;;  %2659 = vmatpush.msra.mxu2 %v2231_v36  ;;  %v1450_v36 = vld [vmem:[#allocation2 + $0x15a] sm:$0xff] }
 0x284   : > { %1595 = vst.msk [vmem:[#allocation3 + $0x58] sm:$0xff] %vm1583_vm9, %v1510_v41  ;;  %2352 = vmatpush.msra.mxu1 %v2229_v28 }
 0x285   : > { %2660 = vmatpush.msra.mxu2 %v2230_v37 }
 0x286   : > { %2353 = vmatpush.msra.mxu1 %v2228_v31 }
 0x287   : > { %1918 = vrot.lane.b32.xlu0 %v1832_v29, %s2696_s16  ;;  %2075 = vrot.lane.b32.xlu2 %v2007_v52, %s2698_s20  ;;  %v1626_v29 = vld [vmem:[#allocation2 + $0x98] sm:$0xff] }
 0x288   : > { %1723 = vrot.lane.b32.xlu1 %v1638_v33, %s2697_s17  ;;  %2661 = vmatpush.msra.mxu2 %v2229_v28  ;;  %v1643_v28 = vld [vmem:[#allocation2 + $0x168] sm:$0xff] }
 0x289   : > { %v1532_v11 = vpop.permute.xlu0 %1531  ;;  %v1536_v34 = vpop.permute.xlu2 %1535 }
 0x28a   : > { %1606 = vst.msk [vmem:[#allocation3 + $0xb0] sm:$0xff] %vm1583_vm9, %v1532_v11  ;;  %v1516_v38 = vpop.permute.xlu1 %1515  ;;  %2662 = vmatpush.msra.mxu2 %v2228_v31  ;;  %v2013_v11 = vld [vmem:[#allocation2 + $0xaa] sm:$0xff] }
 0x28b   : > { %1608 = vst.msk [vmem:[#allocation3 + $0xc0] sm:$0xff] %vm1583_vm9, %v1536_v34  ;;  %v2012_v34 = vld [vmem:[#allocation2 + $0x9a] sm:$0xff] }
 0x28c   : > { %1598 = vst.msk [vmem:[#allocation3 + $0x70] sm:$0xff] %vm1583_vm9, %v1516_v38 }
 0x28f   : > { %1886 = vrot.lane.b32.xlu0 %v1816_v7, %s2696_s16  ;;  %1691 = vrot.lane.b32.xlu2 %v1622_v43, %s2697_s17 }
 0x290   : > { %2109 = vrot.lane.b32.xlu1 %v3509_v32, %s2698_s20 }
 0x291   : > { %v1538_v40 = vpop.permute.xlu0 %1537  ;;  %v1714_v44 = vpop.permute.xlu2 %1713 }
 0x292   : > { %1609 = vst.msk [vmem:[#allocation3 + $0xc8] sm:$0xff] %vm1583_vm9, %v1538_v40  ;;  %v1522_v15 = vpop.permute.xlu1 %1521 }
 0x293   : > { %1794 = vst.msk [vmem:[#allocation3 + $0x80] sm:$0xff] %vm1777_vm10, %v1714_v44  ;;  %v1628_v44 = vld [vmem:[#allocation2 + $0xb0] sm:$0xff] }
 0x294   : > { %1601 = vst.msk [vmem:[#allocation3 + $0x88] sm:$0xff] %vm1583_vm9, %v1522_v15  ;;  %v1627_v15 = vld [vmem:[#allocation2 + $0xa8] sm:$0xff] }
 0x297   : > { %1920 = vrot.lane.b32.xlu0 %v1833_v35, %s2696_s16  ;;  %2077 = vrot.lane.b32.xlu2 %v2008_v47, %s2698_s20  ;;  %v2029_v35 = vld [vmem:[#allocation2 + $0x16a] sm:$0xff] }
 0x298   : > { %1725 = vrot.lane.b32.xlu1 %v1639_v48, %s2697_s17 }
 0x299   : > { %v1907_v32 = vpop.permute.xlu0 %1906  ;;  %v1682_v49 = vpop.permute.xlu2 %1681 }
 0x29a   : > { %1987 = vst.msk [vmem:[#allocation3 + $0x80] sm:$0xff] %vm1970_vm11, %v1907_v32  ;;  %v1528_v9 = vpop.permute.xlu1 %1527 }
 0x29b   : > { %1778 = vst.msk [vmem:[#allocation3] sm:$0xff] %vm1777_vm10, %v1682_v49  ;;  %v1645_v49 = vld [vmem:[#allocation2 + $0x180] sm:$0xff] }
 0x29c   : > { %1604 = vst.msk [vmem:[#allocation3 + $0xa0] sm:$0xff] %vm1583_vm9, %v1528_v9  ;;  %v1644_v9 = vld [vmem:[#allocation2 + $0x170] sm:$0xff] }
 0x29f   : > { %1888 = vrot.lane.b32.xlu0 %v1817_v53, %s2696_s16  ;;  %1693 = vrot.lane.b32.xlu2 %v1623_v51, %s2697_s17  ;;  %v1820_v53 = vld [vmem:[#allocation2 + $0xa9] sm:$0xff] }
 0x2a0   : > { %2111 = vrot.lane.b32.xlu1 %v2025_v59, %s2698_s20 }
 0x2a1   : > { %v1875_v61 = vpop.permute.xlu0 %1874  ;;  %v2068_v0 = vpop.permute.xlu2 %2067 }
 0x2a2   : > { %1971 = vst.msk [vmem:[#allocation3] sm:$0xff] %vm1970_vm11, %v1875_v61  ;;  %v1534_v16 = vpop.permute.xlu1 %1533 }
 0x2a3   : > { %2164 = vst.msk [vmem:[#allocation3] sm:$0xff] %vm2163_vm12, %v2068_v0 }
 0x2a4   : > { %1607 = vst.msk [vmem:[#allocation3 + $0xb8] sm:$0xff] %vm1583_vm9, %v1534_v16 }
 0x2a7   : > { %1922 = vrot.lane.b32.xlu0 %v1834_v4, %s2696_s16  ;;  %2079 = vrot.lane.b32.xlu2 %v2009_v55, %s2698_s20  ;;  %v2031_v4 = vld [vmem:[#allocation2 + $0x182] sm:$0xff]  ;;  %v2030_v55 = vld [vmem:[#allocation2 + $0x172] sm:$0xff] }
 0x2a8   : > { %1727 = vrot.lane.b32.xlu1 %v1640_v57, %s2697_s17  ;;  %v1837_v57 = vld [vmem:[#allocation2 + $0x171] sm:$0xff] }
 0x2a9   : > { %v1909_v1 = vpop.permute.xlu0 %1908  ;;  %v1684_v63 = vpop.permute.xlu2 %1683 }
 0x2aa   : > { %1779 = vst.msk [vmem:[#allocation3 + $0x8] sm:$0xff] %vm1777_vm10, %v1684_v63  ;;  %v1540_v30 = vpop.permute.xlu1 %1539  ;;  %v2196_v2 = vld [vmem:[#allocation3] sm:$0xff] }
 0x2ab   : > { %1610 = vst.msk [vmem:[#allocation3 + $0xd0] sm:$0xff] %vm1583_vm9, %v1540_v30  ;;  %2613 = vmatmul.msk.f32.vlgmr.msra.gmra.mxu1 %vm2241_vm13, %v2196_v2  ;;  %v1822_v2 = vld [vmem:[#allocation2 + $0xc1] sm:$0xff] }
 0x2af   : > { %1890 = vrot.lane.b32.xlu0 %v1818_v50, %s2696_s16  ;;  %1695 = vrot.lane.b32.xlu2 %v1624_v60, %s2697_s17  ;;  %v1821_v50 = vld [vmem:[#allocation2 + $0xb1] sm:$0xff] }
 0x2b0   : > { %2113 = vrot.lane.b32.xlu1 %v2026_v6, %s2698_s20 }
 0x2b1   : > { %v1877_v8 = vpop.permute.xlu0 %1876  ;;  %v2070_v10 = vpop.permute.xlu2 %2069 }
 0x2b2   : > { %1972 = vst.msk [vmem:[#allocation3 + $0x8] sm:$0xff] %vm1970_vm11, %v1877_v8  ;;  %v2100_v12 = vpop.permute.xlu1 %2099 }
 0x2b3   : > { %2165 = vst.msk [vmem:[#allocation3 + $0x8] sm:$0xff] %vm2163_vm12, %v2070_v10 }
 0x2b4   : > { %2180 = vst.msk [vmem:[#allocation3 + $0x80] sm:$0xff] %vm2163_vm12, %v2100_v12 }
 0x2b7   : > { %1924 = vrot.lane.b32.xlu0 %v1835_v17, %s2696_s16  ;;  %2081 = vrot.lane.b32.xlu2 %v2010_v19, %s2698_s20  ;;  %v1838_v17 = vld [vmem:[#allocation2 + $0x181] sm:$0xff]  ;;  %v2014_v19 = vld [vmem:[#allocation2 + $0xb2] sm:$0xff] }
 0x2b8   : > { %1729 = vrot.lane.b32.xlu1 %v1641_v5, %s2697_s17 }
 0x2b9   : > { %v1911_v45 = vpop.permute.xlu0 %1910  ;;  %v1686_v20 = vpop.permute.xlu2 %1685 }
 0x2ba   : > { %1780 = vst.msk [vmem:[#allocation3 + $0x10] sm:$0xff] %vm1777_vm10, %v1686_v20  ;;  %v1716_v39 = vpop.permute.xlu1 %1715  ;;  %v2197_v14 = vld [vmem:[#allocation3 + $0x8] sm:$0xff] }
 0x2bb   : > { %1795 = vst.msk [vmem:[#allocation3 + $0x88] sm:$0xff] %vm1777_vm10, %v1716_v39  ;;  %v2212_v42 = vld [vmem:[#allocation3 + $0x80] sm:$0xff]  ;;  %2614 = vmatmul.msk.f32.gmra.mxu1 %vm2241_vm13, %v2197_v14  ;;  %v1629_v39 = vld [vmem:[#allocation2 + $0xc0] sm:$0xff] }
 0x2bc   : > { %1988 = vst.msk [vmem:[#allocation3 + $0x88] sm:$0xff] %vm1970_vm11, %v1909_v1  ;;  %2629 = vmatmul.msk.f32.vlgmr.msra.gmra.mxu2 %vm2241_vm13, %v2212_v42 }
 0x2bf   : > { %1892 = vrot.lane.b32.xlu0 %v1819_v21, %s2696_s16  ;;  %1697 = vrot.lane.b32.xlu2 %v1625_v46, %s2697_s17 }
 0x2c0   : > { %2115 = vrot.lane.b32.xlu1 %v2027_v58, %s2698_s20  ;;  %v2016_v58 = vld [vmem:[#allocation2 + $0xca] sm:$0xff] }
 0x2c1   : > { %v1879_v23 = vpop.permute.xlu0 %1878  ;;  %v2072_v3 = vpop.permute.xlu2 %2071 }
 0x2c2   : > { %1973 = vst.msk [vmem:[#allocation3 + $0x10] sm:$0xff] %vm1970_vm11, %v1879_v23  ;;  %v2102_v24 = vpop.permute.xlu1 %2101  ;;  %v2015_v23 = vld [vmem:[#allocation2 + $0xc2] sm:$0xff] }
 0x2c3   : > { %2166 = vst.msk [vmem:[#allocation3 + $0x10] sm:$0xff] %vm2163_vm12, %v2072_v3  ;;  %v1646_v3 = vld [vmem:[#allocation2 + $0x188] sm:$0xff] }
 0x2c4   : > { %2181 = vst.msk [vmem:[#allocation3 + $0x88] sm:$0xff] %vm2163_vm12, %v2102_v24 }
 0x2c7   : > { %1926 = vrot.lane.b32.xlu0 %v1836_v56, %s2696_s16  ;;  %2083 = vrot.lane.b32.xlu2 %v2011_v62, %s2698_s20 }
 0x2c8   : > { %1731 = vrot.lane.b32.xlu1 %v1642_v25, %s2697_s17  ;;  %v1631_v25 = vld [vmem:[#allocation2 + $0xd8] sm:$0xff] }
 0x2c9   : > { %v1913_v27 = vpop.permute.xlu0 %1912  ;;  %v1688_v26 = vpop.permute.xlu2 %1687 }
 0x2ca   : > { %1781 = vst.msk [vmem:[#allocation3 + $0x18] sm:$0xff] %vm1777_vm10, %v1688_v26  ;;  %v1718_v22 = vpop.permute.xlu1 %1717  ;;  %v2198_v41 = vld [vmem:[#allocation3 + $0x10] sm:$0xff]  ;;  %v2032_v26 = vld [vmem:[#allocation2 + $0x18a] sm:$0xff] }
 0x2cb   : > { %1796 = vst.msk [vmem:[#allocation3 + $0x90] sm:$0xff] %vm1777_vm10, %v1718_v22  ;;  %v2213_v13 = vld [vmem:[#allocation3 + $0x88] sm:$0xff]  ;;  %2615 = vmatmul.msk.f32.gmra.mxu1 %vm2241_vm13, %v2198_v41 }
 0x2cc   : > { %1989 = vst.msk [vmem:[#allocation3 + $0x90] sm:$0xff] %vm1970_vm11, %v1911_v45  ;;  %2630 = vmatmul.msk.f32.gmra.mxu2 %vm2241_vm13, %v2213_v13 }
 0x2cf   : > { %1541 = vrot.lane.b32.xlu0 %v1450_v36, %s2695_s15  ;;  %1699 = vrot.lane.b32.xlu2 %v1626_v29, %s2697_s17 }
 0x2d0   : > { %2117 = vrot.lane.b32.xlu1 %v1450_v36, %s2698_s20 }
 0x2d1   : > { %v1881_v52 = vpop.permute.xlu0 %1880  ;;  %v2074_v33 = vpop.permute.xlu2 %2073 }
 0x2d2   : > { %1974 = vst.msk [vmem:[#allocation3 + $0x18] sm:$0xff] %vm1970_vm11, %v1881_v52  ;;  %v2104_v37 = vpop.permute.xlu1 %2103  ;;  %v1648_v52 = vld [vmem:[#allocation2 + $0x1a0] sm:$0xff] }
 0x2d3   : > { %2167 = vst.msk [vmem:[#allocation3 + $0x18] sm:$0xff] %vm2163_vm12, %v2074_v33  ;;  %v1647_v33 = vld [vmem:[#allocation2 + $0x198] sm:$0xff] }
 0x2d4   : > { %2182 = vst.msk [vmem:[#allocation3 + $0x90] sm:$0xff] %vm2163_vm12, %v2104_v37  ;;  %v1823_v37 = vld [vmem:[#allocation2 + $0xc9] sm:$0xff] }
 0x2d7   : > { %2087 = vrot.lane.b32.xlu0 %v2013_v11, %s2698_s20  ;;  %2085 = vrot.lane.b32.xlu2 %v2012_v34, %s2698_s20 }
 0x2d8   : > { %1733 = vrot.lane.b32.xlu1 %v1643_v28, %s2697_s17 }
 0x2d9   : > { %v1915_v38 = vpop.permute.xlu0 %1914  ;;  %v1690_v31 = vpop.permute.xlu2 %1689 }
 0x2da   : > { %1782 = vst.msk [vmem:[#allocation3 + $0x20] sm:$0xff] %vm1777_vm10, %v1690_v31  ;;  %v1720_v7 = vpop.permute.xlu1 %1719  ;;  %v2199_v43 = vld [vmem:[#allocation3 + $0x18] sm:$0xff]  ;;  %v2033_v31 = vld [vmem:[#allocation2 + $0x19a] sm:$0xff] }
 0x2db   : > { %1797 = vst.msk [vmem:[#allocation3 + $0x98] sm:$0xff] %vm1777_vm10, %v1720_v7  ;;  %v2214_v40 = vld [vmem:[#allocation3 + $0x90] sm:$0xff]  ;;  %2616 = vmatmul.msk.f32.gmra.mxu1 %vm2241_vm13, %v2199_v43 }
 0x2dc   : > { %1990 = vst.msk [vmem:[#allocation3 + $0x98] sm:$0xff] %vm1970_vm11, %v1913_v27  ;;  %2631 = vmatmul.msk.f32.gmra.mxu2 %vm2241_vm13, %v2214_v40  ;;  %v1630_v27 = vld [vmem:[#allocation2 + $0xc8] sm:$0xff]  ;;  %v1840_v7 = vld [vmem:[#allocation2 + $0x199] sm:$0xff] }
 0x2dd   : > { %v3750_v43 = vld [vmem:[%s3940_s4] ss:$0 sm:$0xff] }
 0x2df   : > { %1703 = vrot.lane.b32.xlu0 %v1628_v44, %s2697_s17  ;;  %1701 = vrot.lane.b32.xlu2 %v1627_v15, %s2697_s17 }
 0x2e0   : > { %2119 = vrot.lane.b32.xlu1 %v2029_v35, %s2698_s20 }
 0x2e1   : > { %v1883_v47 = vpop.permute.xlu0 %1882  ;;  %v2076_v48 = vpop.permute.xlu2 %2075 }
 0x2e2   : > { %1975 = vst.msk [vmem:[#allocation3 + $0x20] sm:$0xff] %vm1970_vm11, %v1883_v47  ;;  %v2106_v32 = vpop.permute.xlu1 %2105 }
 0x2e3   : > { %2168 = vst.msk [vmem:[#allocation3 + $0x20] sm:$0xff] %vm2163_vm12, %v2076_v48 }
 0x2e4   : > { %2183 = vst.msk [vmem:[#allocation3 + $0x98] sm:$0xff] %vm2163_vm12, %v2106_v32 }
 0x2e7   : > { %1737 = vrot.lane.b32.xlu0 %v1645_v49, %s2697_s17  ;;  %1735 = vrot.lane.b32.xlu2 %v1644_v9, %s2697_s17  ;;  %v1824_v9 = vld [vmem:[#allocation2 + $0xd9] sm:$0xff] }
 0x2e8   : > { %1894 = vrot.lane.b32.xlu1 %v1820_v53, %s2696_s16 }
 0x2e9   : > { %v1917_v51 = vpop.permute.xlu0 %1916  ;;  %v1692_v59 = vpop.permute.xlu2 %1691 }
 0x2ea   : > { %1783 = vst.msk [vmem:[#allocation3 + $0x28] sm:$0xff] %vm1777_vm10, %v1692_v59  ;;  %v1722_v61 = vpop.permute.xlu1 %1721  ;;  %v2200_v0 = vld [vmem:[#allocation3 + $0x20] sm:$0xff] }
 0x2eb   : > { %1798 = vst.msk [vmem:[#allocation3 + $0xa0] sm:$0xff] %vm1777_vm10, %v1722_v61  ;;  %v2215_v16 = vld [vmem:[#allocation3 + $0x98] sm:$0xff]  ;;  %2617 = vmatmul.msk.f32.gmra.mxu1 %vm2241_vm13, %v2200_v0  ;;  %v2017_v0 = vld [vmem:[#allocation2 + $0xda] sm:$0xff] }
 0x2ec   : > { %1991 = vst.msk [vmem:[#allocation3 + $0xa0] sm:$0xff] %vm1970_vm11, %v1915_v38  ;;  %2632 = vmatmul.msk.f32.gmra.mxu2 %vm2241_vm13, %v2215_v16  ;;  %v2034_v38 = vld [vmem:[#allocation2 + $0x1a2] sm:$0xff] }
 0x2ed   : > { %v1841_v61 = vld [vmem:[#allocation2 + $0x1a1] sm:$0xff] }
 0x2ef   : > { %2123 = vrot.lane.b32.xlu0 %v2031_v4, %s2698_s20  ;;  %2121 = vrot.lane.b32.xlu2 %v2030_v55, %s2698_s20 }
 0x2f0   : > { %1928 = vrot.lane.b32.xlu1 %v1837_v57, %s2696_s16 }
 0x2f1   : > { %v1885_v1 = vpop.permute.xlu0 %1884  ;;  %v2078_v63 = vpop.permute.xlu2 %2077 }
 0x2f2   : > { %1976 = vst.msk [vmem:[#allocation3 + $0x28] sm:$0xff] %vm1970_vm11, %v1885_v1  ;;  %v2108_v30 = vpop.permute.xlu1 %2107 }
 0x2f3   : > { %2169 = vst.msk [vmem:[#allocation3 + $0x28] sm:$0xff] %vm2163_vm12, %v2078_v63 }
 0x2f4   : > { %2184 = vst.msk [vmem:[#allocation3 + $0xa0] sm:$0xff] %vm2163_vm12, %v2108_v30 }
 0x2f7   : > { %1898 = vrot.lane.b32.xlu0 %v1822_v2, %s2696_s16  ;;  %1896 = vrot.lane.b32.xlu2 %v1821_v50, %s2696_s16  ;;  %v1825_v2 = vld [vmem:[#allocation2 + $0xe1] sm:$0xff] }
 0x2f8   : > { %1543 = vrot.lane.b32.xlu1 %v2029_v35, %s2695_s15 }
 0x2f9   : > { %v1919_v60 = vpop.permute.xlu0 %1918  ;;  %v1694_v6 = vpop.permute.xlu2 %1693 }
 0x2fa   : > { %1784 = vst.msk [vmem:[#allocation3 + $0x30] sm:$0xff] %vm1777_vm10, %v1694_v6  ;;  %v1724_v8 = vpop.permute.xlu1 %1723  ;;  %v2201_v10 = vld [vmem:[#allocation3 + $0x28] sm:$0xff] }
 0x2fb   : > { %1799 = vst.msk [vmem:[#allocation3 + $0xa8] sm:$0xff] %vm1777_vm10, %v1724_v8  ;;  %v2216_v12 = vld [vmem:[#allocation3 + $0xa0] sm:$0xff]  ;;  %2618 = vmatmul.msk.f32.gmra.mxu1 %vm2241_vm13, %v2201_v10 }
 0x2fc   : > { %1992 = vst.msk [vmem:[#allocation3 + $0xa8] sm:$0xff] %vm1970_vm11, %v1917_v51  ;;  %2633 = vmatmul.msk.f32.gmra.mxu2 %vm2241_vm13, %v2216_v12 }
 0x2ff   : > { %1932 = vrot.lane.b32.xlu0 %v3420_v18, %s2696_s16  ;;  %1930 = vrot.lane.b32.xlu2 %v1838_v17, %s2696_s16 }
 0x300   : > { %2089 = vrot.lane.b32.xlu1 %v2014_v19, %s2698_s20 }
 0x301   : > { %v1887_v5 = vpop.permute.xlu0 %1886  ;;  %v2080_v45 = vpop.permute.xlu2 %2079 }
 0x302   : > { %1977 = vst.msk [vmem:[#allocation3 + $0x30] sm:$0xff] %vm1970_vm11, %v1887_v5  ;;  %v2110_v20 = vpop.permute.xlu1 %2109 }
 0x303   : > { %2170 = vst.msk [vmem:[#allocation3 + $0x30] sm:$0xff] %vm2163_vm12, %v2080_v45 }
 0x304   : > { %2185 = vst.msk [vmem:[#allocation3 + $0xa8] sm:$0xff] %vm2163_vm12, %v2110_v20 }
 0x307   : > { %1547 = vrot.lane.b32.xlu0 %v2031_v4, %s2695_s15  ;;  %1545 = vrot.lane.b32.xlu2 %v2030_v55, %s2695_s15 }
 0x308   : > { %1705 = vrot.lane.b32.xlu1 %v1629_v39, %s2697_s17 }
 0x309   : > { %v1921_v18 = vpop.permute.xlu0 %1920  ;;  %v1696_v14 = vpop.permute.xlu2 %1695 }
 0x30a   : > { %1785 = vst.msk [vmem:[#allocation3 + $0x38] sm:$0xff] %vm1777_vm10, %v1696_v14  ;;  %v1726_v42 = vpop.permute.xlu1 %1725  ;;  %v2202_v21 = vld [vmem:[#allocation3 + $0x30] sm:$0xff] }
 0x30b   : > { %1800 = vst.msk [vmem:[#allocation3 + $0xb0] sm:$0xff] %vm1777_vm10, %v1726_v42  ;;  %v2217_v46 = vld [vmem:[#allocation3 + $0xa8] sm:$0xff]  ;;  %2619 = vmatmul.msk.f32.gmra.mxu1 %vm2241_vm13, %v2202_v21 }
 0x30c   : > { %1993 = vst.msk [vmem:[#allocation3 + $0xb0] sm:$0xff] %vm1970_vm11, %v1919_v60  ;;  %2634 = vmatmul.msk.f32.gmra.mxu2 %vm2241_vm13, %v2217_v46  ;;  %v1632_v60 = vld [vmem:[#allocation2 + $0xe0] sm:$0xff] }
 0x30f   : > { %2093 = vrot.lane.b32.xlu0 %v2016_v58, %s2698_s20  ;;  %2091 = vrot.lane.b32.xlu2 %v2015_v23, %s2698_s20 }
 0x310   : > { %1739 = vrot.lane.b32.xlu1 %v1646_v3, %s2697_s17 }
 0x311   : > { %v1889_v24 = vpop.permute.xlu0 %1888  ;;  %v2082_v56 = vpop.permute.xlu2 %2081 }
 0x312   : > { %1978 = vst.msk [vmem:[#allocation3 + $0x38] sm:$0xff] %vm1970_vm11, %v1889_v24  ;;  %v2112_v62 = vpop.permute.xlu1 %2111 }
 0x313   : > { %2171 = vst.msk [vmem:[#allocation3 + $0x38] sm:$0xff] %vm2163_vm12, %v2082_v56 }
 0x314   : > { %2186 = vst.msk [vmem:[#allocation3 + $0xb0] sm:$0xff] %vm2163_vm12, %v2112_v62 }
 0x317   : > { %1709 = vrot.lane.b32.xlu0 %v1631_v25, %s2697_s17  ;;  %1707 = vrot.lane.b32.xlu2 %v1630_v27, %s2697_s17 }
 0x318   : > { %2125 = vrot.lane.b32.xlu1 %v2032_v26, %s2698_s20 }
 0x319   : > { %v1923_v22 = vpop.permute.xlu0 %1922  ;;  %v1698_v41 = vpop.permute.xlu2 %1697 }
 0x31a   : > { %1786 = vst.msk [vmem:[#allocation3 + $0x40] sm:$0xff] %vm1777_vm10, %v1698_v41  ;;  %v1728_v13 = vpop.permute.xlu1 %1727  ;;  %v2203_v36 = vld [vmem:[#allocation3 + $0x38] sm:$0xff] }
 0x31b   : > { %1801 = vst.msk [vmem:[#allocation3 + $0xb8] sm:$0xff] %vm1777_vm10, %v1728_v13  ;;  %v2218_v29 = vld [vmem:[#allocation3 + $0xb0] sm:$0xff]  ;;  %2620 = vmatmul.msk.f32.gmra.mxu1 %vm2241_vm13, %v2203_v36 }
 0x31c   : > { %1994 = vst.msk [vmem:[#allocation3 + $0xb8] sm:$0xff] %vm1970_vm11, %v1921_v18  ;;  %2635 = vmatmul.msk.f32.gmra.mxu2 %vm2241_vm13, %v2218_v29 }
 0x31f   : > { %1743 = vrot.lane.b32.xlu0 %v1648_v52, %s2697_s17  ;;  %1741 = vrot.lane.b32.xlu2 %v1647_v33, %s2697_s17 }
 0x320   : > { %1900 = vrot.lane.b32.xlu1 %v1823_v37, %s2696_s16 }
 0x321   : > { %v1891_v11 = vpop.permute.xlu0 %1890  ;;  %v2084_v34 = vpop.permute.xlu2 %2083 }
 0x322   : > { %1979 = vst.msk [vmem:[#allocation3 + $0x40] sm:$0xff] %vm1970_vm11, %v1891_v11  ;;  %v2114_v28 = vpop.permute.xlu1 %2113 }
 0x323   : > { %2172 = vst.msk [vmem:[#allocation3 + $0x40] sm:$0xff] %vm2163_vm12, %v2084_v34 }
 0x324   : > { %2187 = vst.msk [vmem:[#allocation3 + $0xb8] sm:$0xff] %vm2163_vm12, %v2114_v28 }
 0x327   : > { %2129 = vrot.lane.b32.xlu0 %v2034_v38, %s2698_s20  ;;  %2127 = vrot.lane.b32.xlu2 %v2033_v31, %s2698_s20 }
 0x328   : > { %1934 = vrot.lane.b32.xlu1 %v1840_v7, %s2696_s16  ;;  %v2355_v40 = vpop.f32.mrf.mxu1 }
 0x329   : > { %v2356_v44 = vadd.f32 %v3750_v43, %v2355_v40  ;;  %v1925_v15 = vpop.permute.xlu0 %1924  ;;  %v1700_v35 = vpop.permute.xlu2 %1699 }
 0x32a   : > { %1787 = vst.msk [vmem:[#allocation3 + $0x48] sm:$0xff] %vm1777_vm10, %v1700_v35  ;;  %v1730_v47 = vpop.permute.xlu1 %1729  ;;  %v2204_v48 = vld [vmem:[#allocation3 + $0x40] sm:$0xff] }
 0x32b   : > { %v2451_v32 = vmax.f32 %v2356_v44, 0.0  ;;  %1802 = vst.msk [vmem:[#allocation3 + $0xc0] sm:$0xff] %vm1777_vm10, %v1730_v47  ;;  %v2219_v49 = vld [vmem:[#allocation3 + $0xb8] sm:$0xff]  ;;  %2621 = vmatmul.msk.f32.gmra.mxu1 %vm2241_vm13, %v2204_v48 }
 0x32c   : > { %1995 = vst.msk [vmem:[#allocation3 + $0xc0] sm:$0xff] %vm1970_vm11, %v1923_v22  ;;  %2636 = vmatmul.msk.f32.gmra.mxu2 %vm2241_vm13, %v2219_v49 }
 0x32d   : > { %2484 = vst.msk [vmem:[%s3761_s25] sm:$0xff] %vm2483_vm14, %v2451_v32 }
 0x32f   : > { %2097 = vrot.lane.b32.xlu0 %v3487_v54, %s2698_s20  ;;  %1902 = vrot.lane.b32.xlu2 %v1824_v9, %s2696_s16 }
 0x330   : > { %1549 = vrot.lane.b32.xlu1 %v2032_v26, %s2695_s15 }
 0x331   : > { %v1893_v53 = vpop.permute.xlu0 %1892  ;;  %v2086_v51 = vpop.permute.xlu2 %2085 }
 0x332   : > { %1980 = vst.msk [vmem:[#allocation3 + $0x48] sm:$0xff] %vm1970_vm11, %v1893_v53  ;;  %v2116_v59 = vpop.permute.xlu1 %2115 }
 0x333   : > { %2173 = vst.msk [vmem:[#allocation3 + $0x48] sm:$0xff] %vm2163_vm12, %v2086_v51 }
 0x334   : > { %2188 = vst.msk [vmem:[#allocation3 + $0xc0] sm:$0xff] %vm2163_vm12, %v2116_v59 }
 0x337   : > { %1936 = vrot.lane.b32.xlu2 %v1841_v61, %s2696_s16 }
 0x338   : > { %2095 = vrot.lane.b32.xlu1 %v2017_v0, %s2698_s20  ;;  %v2358_v54 = vpop.f32.mrf.mxu1 }
 0x339   : > { %v2359_v16 = vadd.f32 %v3750_v43, %v2358_v54  ;;  %v1927_v4 = vpop.permute.xlu0 %1926  ;;  %v1702_v55 = vpop.permute.xlu2 %1701 }
 0x33a   : > { %1788 = vst.msk [vmem:[#allocation3 + $0x50] sm:$0xff] %vm1777_vm10, %v1702_v55  ;;  %v1732_v57 = vpop.permute.xlu1 %1731  ;;  %v2205_v1 = vld [vmem:[#allocation3 + $0x48] sm:$0xff] }
 0x33b   : > { %v2452_v63 = vmax.f32 %v2359_v16, 0.0  ;;  %1803 = vst.msk [vmem:[#allocation3 + $0xc8] sm:$0xff] %vm1777_vm10, %v1732_v57  ;;  %v2220_v30 = vld [vmem:[#allocation3 + $0xc0] sm:$0xff]  ;;  %2622 = vmatmul.msk.f32.gmra.mxu1 %vm2241_vm13, %v2205_v1 }
 0x33c   : > { %1996 = vst.msk [vmem:[#allocation3 + $0xc8] sm:$0xff] %vm1970_vm11, %v1925_v15  ;;  %2637 = vmatmul.msk.f32.gmra.mxu2 %vm2241_vm13, %v2220_v30 }
 0x33d   : > { %2485 = vst.msk [vmem:[%s3761_s25 + $0x8] sm:$0xff] %vm2483_vm14, %v2452_v63 }
 0x33f   : > { %v2403_v50 = vpop.f32.mrf.mxu2  ;;  %1904 = vrot.lane.b32.xlu2 %v1825_v2, %s2696_s16 }
 0x340   : > { %v2404_v6 = vadd.f32 %v3750_v43, %v2403_v50  ;;  %1711 = vrot.lane.b32.xlu1 %v1632_v60, %s2697_s17 }
 0x341   : > { %v1542_v8 = vpop.permute.xlu0 %1541  ;;  %v1736_v10 = vpop.permute.xlu2 %1735 }
 0x342   : > { %v2467_v12 = vmax.f32 %v2404_v6, 0.0  ;;  %1611 = vst.msk [vmem:[#allocation3 + $0xd8] sm:$0xff] %vm1583_vm9, %v1542_v8  ;;  %v2118_v17 = vpop.permute.xlu1 %2117 }
 0x343   : > { %1805 = vst.msk [vmem:[#allocation3 + $0xd8] sm:$0xff] %vm1777_vm10, %v1736_v10 }
 0x344   : > { %2500 = vst.msk [vmem:[%s3761_s25 + $0x80] sm:$0xff] %vm2483_vm14, %v2467_v12 }
 0x345   : > { %2189 = vst.msk [vmem:[#allocation3 + $0xc8] sm:$0xff] %vm2163_vm12, %v2118_v17 }
 0x348   : > { %v2361_v19 = vpop.f32.mrf.mxu1 }
 0x349   : > { %v2362_v5 = vadd.f32 %v3750_v43, %v2361_v19  ;;  %v2088_v45 = vpop.permute.xlu0 %2087  ;;  %v2122_v20 = vpop.permute.xlu2 %2121 }
 0x34a   : > { %v1734_v39 = vpop.permute.xlu1 %1733 }
 0x34b   : > { %v2453_v18 = vmax.f32 %v2362_v5, 0.0  ;;  %1804 = vst.msk [vmem:[#allocation3 + $0xd0] sm:$0xff] %vm1777_vm10, %v1734_v39 }
 0x34c   : > { %1997 = vst.msk [vmem:[#allocation3 + $0xd0] sm:$0xff] %vm1970_vm11, %v1927_v4  ;;  %v2221_v14 = vld [vmem:[#allocation3 + $0xc8] sm:$0xff] }
 0x34d   : > { %2486 = vst.msk [vmem:[%s3761_s25 + $0x10] sm:$0xff] %vm2483_vm14, %v2453_v18  ;;  %2638 = vmatmul.msk.f32.gmra.mxu2 %vm2241_vm13, %v2221_v14 }
 0x34f   : > { %v2406_v42 = vpop.f32.mrf.mxu2 }
 0x350   : > { %v2407_v21 = vadd.f32 %v3750_v43, %v2406_v42 }
 0x351   : > { %v1704_v46 = vpop.permute.xlu0 %1703  ;;  %v1897_v58 = vpop.permute.xlu2 %1896 }
 0x352   : > { %v2468_v23 = vmax.f32 %v2407_v21, 0.0  ;;  %1789 = vst.msk [vmem:[#allocation3 + $0x58] sm:$0xff] %vm1777_vm10, %v1704_v46  ;;  %v2120_v3 = vpop.permute.xlu1 %2119 }
 0x353   : > { %1982 = vst.msk [vmem:[#allocation3 + $0x58] sm:$0xff] %vm1970_vm11, %v1897_v58 }
 0x354   : > { %2501 = vst.msk [vmem:[%s3761_s25 + $0x88] sm:$0xff] %vm2483_vm14, %v2468_v23 }
 0x355   : > { %2190 = vst.msk [vmem:[#allocation3 + $0xd0] sm:$0xff] %vm2163_vm12, %v2120_v3 }
 0x358   : > { %v2364_v24 = vpop.f32.mrf.mxu1 }
 0x359   : > { %v2365_v56 = vadd.f32 %v3750_v43, %v2364_v24  ;;  %v1738_v62 = vpop.permute.xlu0 %1737  ;;  %v1931_v25 = vpop.permute.xlu2 %1930 }
 0x35a   : > { %v1895_v27 = vpop.permute.xlu1 %1894 }
 0x35b   : > { %v2454_v26 = vmax.f32 %v2365_v56, 0.0  ;;  %1981 = vst.msk [vmem:[#allocation3 + $0x50] sm:$0xff] %vm1970_vm11, %v1895_v27 }
 0x35c   : > { %2174 = vst.msk [vmem:[#allocation3 + $0x50] sm:$0xff] %vm2163_vm12, %v2088_v45  ;;  %v2222_v22 = vld [vmem:[#allocation3 + $0xd0] sm:$0xff] }
 0x35d   : > { %2487 = vst.msk [vmem:[%s3761_s25 + $0x18] sm:$0xff] %vm2483_vm14, %v2454_v26  ;;  %2639 = vmatmul.msk.f32.gmra.mxu2 %vm2241_vm13, %v2222_v22 }
 0x35f   : > { %v2409_v41 = vpop.f32.mrf.mxu2 }
 0x360   : > { %v2410_v13 = vadd.f32 %v3750_v43, %v2409_v41 }
 0x361   : > { %v2124_v36 = vpop.permute.xlu0 %2123  ;;  %v1546_v29 = vpop.permute.xlu2 %1545 }
 0x362   : > { %v2469_v52 = vmax.f32 %v2410_v13, 0.0  ;;  %1613 = vst.msk [vmem:[#allocation3 + $0xe8] sm:$0xff] %vm1583_vm9, %v1546_v29  ;;  %v1929_v33 = vpop.permute.xlu1 %1928 }
 0x363   : > { %1998 = vst.msk [vmem:[#allocation3 + $0xd8] sm:$0xff] %vm1970_vm11, %v1929_v33  ;;  %v2206_v37 = vld [vmem:[#allocation3 + $0x50] sm:$0xff] }
 0x364   : > { %2502 = vst.msk [vmem:[%s3761_s25 + $0x90] sm:$0xff] %vm2483_vm14, %v2469_v52  ;;  %2623 = vmatmul.msk.f32.gmra.mxu1 %vm2241_vm13, %v2206_v37 }
 0x365   : > { %2191 = vst.msk [vmem:[#allocation3 + $0xd8] sm:$0xff] %vm2163_vm12, %v2122_v20 }
 0x368   : > { %v2367_v11 = vpop.f32.mrf.mxu1 }
 0x369   : > { %v2368_v34 = vadd.f32 %v3750_v43, %v2367_v11  ;;  %v1899_v28 = vpop.permute.xlu0 %1898  ;;  %v2092_v38 = vpop.permute.xlu2 %2091 }
 0x36a   : > { %v1544_v31 = vpop.permute.xlu1 %1543 }
 0x36b   : > { %v2455_v7 = vmax.f32 %v2368_v34, 0.0  ;;  %1612 = vst.msk [vmem:[#allocation3 + $0xe0] sm:$0xff] %vm1583_vm9, %v1544_v31 }
 0x36c   : > { %1806 = vst.msk [vmem:[#allocation3 + $0xe0] sm:$0xff] %vm1777_vm10, %v1738_v62  ;;  %v2223_v40 = vld [vmem:[#allocation3 + $0xd8] sm:$0xff] }
 0x36d   : > { %2488 = vst.msk [vmem:[%s3761_s25 + $0x20] sm:$0xff] %vm2483_vm14, %v2455_v7  ;;  %2640 = vmatmul.msk.f32.gmra.mxu2 %vm2241_vm13, %v2223_v40 }
 0x36e   : > { %1999 = vst.msk [vmem:[#allocation3 + $0xe0] sm:$0xff] %vm1970_vm11, %v1931_v25 }
 0x36f   : > { %2192 = vst.msk [vmem:[#allocation3 + $0xe0] sm:$0xff] %vm2163_vm12, %v2124_v36  ;;  %v2412_v44 = vpop.f32.mrf.mxu2 }
 0x370   : > { %v2413_v15 = vadd.f32 %v3750_v43, %v2412_v44 }
 0x371   : > { %v1933_v35 = vpop.permute.xlu0 %1932  ;;  %v1708_v47 = vpop.permute.xlu2 %1707 }
 0x372   : > { %v2470_v48 = vmax.f32 %v2413_v15, 0.0  ;;  %1791 = vst.msk [vmem:[#allocation3 + $0x68] sm:$0xff] %vm1777_vm10, %v1708_v47  ;;  %v2090_v32 = vpop.permute.xlu1 %2089 }
 0x373   : > { %2175 = vst.msk [vmem:[#allocation3 + $0x58] sm:$0xff] %vm2163_vm12, %v2090_v32 }
 0x374   : > { %2503 = vst.msk [vmem:[%s3761_s25 + $0x98] sm:$0xff] %vm2483_vm14, %v2470_v48 }
 0x376   : > { %v2224_v49 = vld [vmem:[#allocation3 + $0xe0] sm:$0xff] }
 0x377   : > { %2641 = vmatmul.msk.f32.gmra.mxu2 %vm2241_vm13, %v2224_v49 }
 0x378   : > { %v2370_v9 = vpop.f32.mrf.mxu1 }
 0x379   : > { %v2371_v53 = vadd.f32 %v3750_v43, %v2370_v9  ;;  %v1548_v51 = vpop.permute.xlu0 %1547  ;;  %v1742_v59 = vpop.permute.xlu2 %1741 }
 0x37a   : > { %1614 = vst.msk [vmem:[#allocation3 + $0xf0] sm:$0xff] %vm1583_vm9, %v1548_v51  ;;  %v1706_v61 = vpop.permute.xlu1 %1705  ;;  %v2207_v0 = vld [vmem:[#allocation3 + $0x58] sm:$0xff] }
 0x37b   : > { %v2456_v54 = vmax.f32 %v2371_v53, 0.0  ;;  %1808 = vst.msk [vmem:[#allocation3 + $0xf0] sm:$0xff] %vm1777_vm10, %v1742_v59  ;;  %2624 = vmatmul.msk.f32.gmra.mxu1 %vm2241_vm13, %v2207_v0 }
 0x37c   : > { %1790 = vst.msk [vmem:[#allocation3 + $0x60] sm:$0xff] %vm1777_vm10, %v1706_v61 }
 0x37d   : > { %2489 = vst.msk [vmem:[%s3761_s25 + $0x28] sm:$0xff] %vm2483_vm14, %v2456_v54 }
 0x37e   : > { %1983 = vst.msk [vmem:[#allocation3 + $0x60] sm:$0xff] %vm1970_vm11, %v1899_v28 }
 0x37f   : > { %2176 = vst.msk [vmem:[#allocation3 + $0x60] sm:$0xff] %vm2163_vm12, %v2092_v38  ;;  %v2415_v16 = vpop.f32.mrf.mxu2 }
 0x380   : > { %v2416_v4 = vadd.f32 %v3750_v43, %v2415_v16 }
 0x381   : > { %v2094_v55 = vpop.permute.xlu0 %2093  ;;  %v2128_v57 = vpop.permute.xlu2 %2127 }
 0x382   : > { %v2471_v1 = vmax.f32 %v2416_v4, 0.0  ;;  %v1740_v63 = vpop.permute.xlu1 %1739 }
 0x383   : > { %1807 = vst.msk [vmem:[#allocation3 + $0xe8] sm:$0xff] %vm1777_vm10, %v1740_v63 }
 0x384   : > { %2504 = vst.msk [vmem:[%s3761_s25 + $0xa0] sm:$0xff] %vm2483_vm14, %v2471_v1 }
 0x385   : > { %2000 = vst.msk [vmem:[#allocation3 + $0xe8] sm:$0xff] %vm1970_vm11, %v1933_v35 }
 0x386   : > { %v2208_v30 = vld [vmem:[#allocation3 + $0x60] sm:$0xff] }
 0x387   : > { %2625 = vmatmul.msk.f32.gmra.mxu1 %vm2241_vm13, %v2208_v30 }
 0x388   : > { %v2373_v2 = vpop.f32.mrf.mxu1 }
 0x389   : > { %v2374_v50 = vadd.f32 %v3750_v43, %v2373_v2  ;;  %v1710_v60 = vpop.permute.xlu0 %1709  ;;  %v1903_v6 = vpop.permute.xlu2 %1902 }
 0x38a   : > { %1792 = vst.msk [vmem:[#allocation3 + $0x70] sm:$0xff] %vm1777_vm10, %v1710_v60  ;;  %v2126_v8 = vpop.permute.xlu1 %2125 }
 0x38b   : > { %v2457_v10 = vmax.f32 %v2374_v50, 0.0  ;;  %1985 = vst.msk [vmem:[#allocation3 + $0x70] sm:$0xff] %vm1970_vm11, %v1903_v6 }
 0x38c   : > { %2193 = vst.msk [vmem:[#allocation3 + $0xe8] sm:$0xff] %vm2163_vm12, %v2126_v8 }
 0x38d   : > { %2490 = vst.msk [vmem:[%s3761_s25 + $0x30] sm:$0xff] %vm2483_vm14, %v2457_v10 }
 0x38f   : > { %v2418_v12 = vpop.f32.mrf.mxu2 }
 0x390   : > { %v2419_v17 = vadd.f32 %v3750_v43, %v2418_v12 }
 0x391   : > { %v1744_v42 = vpop.permute.xlu0 %1743  ;;  %v1937_v56 = vpop.permute.xlu2 %1936 }
 0x392   : > { %v2472_v19 = vmax.f32 %v2419_v17, 0.0  ;;  %v1901_v5 = vpop.permute.xlu1 %1900 }
 0x393   : > { %1984 = vst.msk [vmem:[#allocation3 + $0x68] sm:$0xff] %vm1970_vm11, %v1901_v5  ;;  %v2225_v45 = vld [vmem:[#allocation3 + $0xe8] sm:$0xff] }
 0x394   : > { %2505 = vst.msk [vmem:[%s3761_s25 + $0xa8] sm:$0xff] %vm2483_vm14, %v2472_v19  ;;  %2642 = vmatmul.msk.f32.gmra.mxu2 %vm2241_vm13, %v2225_v45 }
 0x395   : > { %2177 = vst.msk [vmem:[#allocation3 + $0x68] sm:$0xff] %vm2163_vm12, %v2094_v55 }
 0x398   : > { %v2376_v20 = vpop.f32.mrf.mxu1 }
 0x399   : > { %v2377_v39 = vadd.f32 %v3750_v43, %v2376_v20  ;;  %v2130_v62 = vpop.permute.xlu0 %2129  ;;  %v1905_v37 = vpop.permute.xlu2 %1904 }
 0x39a   : > { %v1935_v18 = vpop.permute.xlu1 %1934 }
 0x39b   : > { %v2458_v14 = vmax.f32 %v2377_v39, 0.0  ;;  %2001 = vst.msk [vmem:[#allocation3 + $0xf0] sm:$0xff] %vm1970_vm11, %v1935_v18 }
 0x39c   : > { %2194 = vst.msk [vmem:[#allocation3 + $0xf0] sm:$0xff] %vm2163_vm12, %v2128_v57  ;;  %v2209_v21 = vld [vmem:[#allocation3 + $0x68] sm:$0xff] }
 0x39d   : > { %2491 = vst.msk [vmem:[%s3761_s25 + $0x38] sm:$0xff] %vm2483_vm14, %v2458_v14  ;;  %2626 = vmatmul.msk.f32.gmra.mxu1 %vm2241_vm13, %v2209_v21 }
 0x39f   : > { %v2421_v46 = vpop.f32.mrf.mxu2 }
 0x3a0   : > { %v2422_v58 = vadd.f32 %v3750_v43, %v2421_v46 }
 0x3a1   : > { %v2098_v11 = vpop.permute.xlu0 %2097 }
 0x3a2   : > { %v2473_v23 = vmax.f32 %v2422_v58, 0.0  ;;  %v1550_v3 = vpop.permute.xlu1 %1549 }
 0x3a3   : > { %1615 = vst.msk [vmem:[#allocation3 + $0xf8] sm:$0xff] %vm1583_vm9, %v1550_v3  ;;  %v2226_v24 = vld [vmem:[#allocation3 + $0xf0] sm:$0xff] }
 0x3a4   : > { %2506 = vst.msk [vmem:[%s3761_s25 + $0xb0] sm:$0xff] %vm2483_vm14, %v2473_v23  ;;  %2643 = vmatmul.msk.f32.gmra.mxu2 %vm2241_vm13, %v2226_v24 }
 0x3a5   : > { %1809 = vst.msk [vmem:[#allocation3 + $0xf8] sm:$0xff] %vm1777_vm10, %v1744_v42 }
 0x3a6   : > { %2002 = vst.msk [vmem:[#allocation3 + $0xf8] sm:$0xff] %vm1970_vm11, %v1937_v56 }
 0x3a7   : > { %2195 = vst.msk [vmem:[#allocation3 + $0xf8] sm:$0xff] %vm2163_vm12, %v2130_v62 }
 0x3a8   : > { %v2379_v25 = vpop.f32.mrf.mxu1 }
 0x3a9   : > { %v2380_v27 = vadd.f32 %v3750_v43, %v2379_v25 }
 0x3aa   : > { %v2096_v26 = vpop.permute.xlu1 %2095 }
 0x3ab   : > { %v2459_v22 = vmax.f32 %v2380_v27, 0.0  ;;  %2178 = vst.msk [vmem:[#allocation3 + $0x70] sm:$0xff] %vm2163_vm12, %v2096_v26 }
 0x3ad   : > { %2492 = vst.msk [vmem:[%s3761_s25 + $0x40] sm:$0xff] %vm2483_vm14, %v2459_v22 }
 0x3ae   : > { %v2227_v41 = vld [vmem:[#allocation3 + $0xf8] sm:$0xff] }
 0x3af   : > { %v2424_v13 = vpop.f32.mrf.mxu2  ;;  %2644 = vmatmul.msk.f32.gmra.mxu2 %vm2241_vm13, %v2227_v41 }
 0x3b0   : > { %v2425_v36 = vadd.f32 %v3750_v43, %v2424_v13 }
 0x3b2   : > { %v2474_v29 = vmax.f32 %v2425_v36, 0.0  ;;  %v1712_v52 = vpop.permute.xlu1 %1711  ;;  %v2210_v33 = vld [vmem:[#allocation3 + $0x70] sm:$0xff] }
 0x3b3   : > { %1793 = vst.msk [vmem:[#allocation3 + $0x78] sm:$0xff] %vm1777_vm10, %v1712_v52  ;;  %2627 = vmatmul.msk.f32.gmra.mxu1 %vm2241_vm13, %v2210_v33 }
 0x3b4   : > { %2507 = vst.msk [vmem:[%s3761_s25 + $0xb8] sm:$0xff] %vm2483_vm14, %v2474_v29 }
 0x3b5   : > { %1986 = vst.msk [vmem:[#allocation3 + $0x78] sm:$0xff] %vm1970_vm11, %v1905_v37 }
 0x3b6   : > { %2179 = vst.msk [vmem:[#allocation3 + $0x78] sm:$0xff] %vm2163_vm12, %v2098_v11 }
 0x3b8   : > { %v2382_v34 = vpop.f32.mrf.mxu1 }
 0x3b9   : > { %v2383_v28 = vadd.f32 %v3750_v43, %v2382_v34 }
 0x3bb   : > { %v2460_v38 = vmax.f32 %v2383_v28, 0.0 }
 0x3bd   : > { %2493 = vst.msk [vmem:[%s3761_s25 + $0x48] sm:$0xff] %vm2483_vm14, %v2460_v38  ;;  %v2211_v31 = vld [vmem:[#allocation3 + $0x78] sm:$0xff] }
 0x3be   : > { %2628 = vmatmul.msk.f32.gmra.mxu1 %vm2241_vm13, %v2211_v31 }
 0x3bf   : > { %v2427_v7 = vpop.f32.mrf.mxu2 }
 0x3c0   : > { %v2428_v40 = vadd.f32 %v3750_v43, %v2427_v7 }
 0x3c2   : > { %v2475_v44 = vmax.f32 %v2428_v40, 0.0 }
 0x3c4   : > { %2508 = vst.msk [vmem:[%s3761_s25 + $0xc0] sm:$0xff] %vm2483_vm14, %v2475_v44 }
 0x3d0   : > { %v2430_v15 = vpop.f32.mrf.mxu2 }
 0x3d1   : > { %v2431_v35 = vadd.f32 %v3750_v43, %v2430_v15 }
 0x3d3   : > { %v2476_v47 = vmax.f32 %v2431_v35, 0.0 }
 0x3d5   : > { %2509 = vst.msk [vmem:[%s3761_s25 + $0xc8] sm:$0xff] %vm2483_vm14, %v2476_v47 }
 0x3e0   : > { %v2433_v48 = vpop.f32.mrf.mxu2 }
 0x3e1   : > { %v2434_v32 = vadd.f32 %v3750_v43, %v2433_v48  ;;  %v2385_v49 = vpop.f32.mrf.mxu1 }
 0x3e2   : > { %v2386_v9 = vadd.f32 %v3750_v43, %v2385_v49 }
 0x3e3   : > { %v2477_v53 = vmax.f32 %v2434_v32, 0.0 }
 0x3e4   : > { %v2461_v51 = vmax.f32 %v2386_v9, 0.0 }
 0x3e5   : > { %2510 = vst.msk [vmem:[%s3761_s25 + $0xd0] sm:$0xff] %vm2483_vm14, %v2477_v53 }
 0x3e6   : > { %2494 = vst.msk [vmem:[%s3761_s25 + $0x50] sm:$0xff] %vm2483_vm14, %v2461_v51 }
 0x3f0   : > { %v2436_v59 = vpop.f32.mrf.mxu2 }
 0x3f1   : > { %v2437_v61 = vadd.f32 %v3750_v43, %v2436_v59 }
 0x3f3   : > { %v2478_v0 = vmax.f32 %v2437_v61, 0.0 }
 0x3f5   : > { %2511 = vst.msk [vmem:[%s3761_s25 + $0xd8] sm:$0xff] %vm2483_vm14, %v2478_v0 }
 0x3f8   : > { %v2388_v54 = vpop.f32.mrf.mxu1 }
 0x3f9   : > { %v2389_v16 = vadd.f32 %v3750_v43, %v2388_v54 }
 0x3fa   : > { %v2439_v4 = vpop.f32.mrf.mxu2 }
 0x3fb   : > { %v2462_v55 = vmax.f32 %v2389_v16, 0.0  ;;  %v2440_v57 = vadd.f32 %v3750_v43, %v2439_v4 }
 0x3fd   : > { %2495 = vst.msk [vmem:[%s3761_s25 + $0x58] sm:$0xff] %vm2483_vm14, %v2462_v55  ;;  %v2479_v1 = vmax.f32 %v2440_v57, 0.0 }
 0x3ff   : > { %2512 = vst.msk [vmem:[%s3761_s25 + $0xe0] sm:$0xff] %vm2483_vm14, %v2479_v1 }
 0x404   : > { %v2391_v63 = vpop.f32.mrf.mxu1 }
 0x405   : > { %v2392_v30 = vadd.f32 %v3750_v43, %v2391_v63 }
 0x407   : > { %v2463_v2 = vmax.f32 %v2392_v30, 0.0 }
 0x409   : > { %2496 = vst.msk [vmem:[%s3761_s25 + $0x60] sm:$0xff] %vm2483_vm14, %v2463_v2 }
 0x417   : > { %v2442_v50 = vpop.f32.mrf.mxu2 }
 0x418   : > { %v2443_v60 = vadd.f32 %v3750_v43, %v2442_v50 }
 0x41a   : > { %v2480_v6 = vmax.f32 %v2443_v60, 0.0  ;;  %v2394_v8 = vpop.f32.mrf.mxu1 }
 0x41b   : > { %v2395_v10 = vadd.f32 %v3750_v43, %v2394_v8 }
 0x41c   : > { %2513 = vst.msk [vmem:[%s3761_s25 + $0xe8] sm:$0xff] %vm2483_vm14, %v2480_v6 }
 0x41d   : > { %v2464_v12 = vmax.f32 %v2395_v10, 0.0 }
 0x41f   : > { %2497 = vst.msk [vmem:[%s3761_s25 + $0x68] sm:$0xff] %vm2483_vm14, %v2464_v12 }
 0x427   : > { %v2445_v17 = vpop.f32.mrf.mxu2 }
 0x428   : > { %v2446_v19 = vadd.f32 %v3750_v43, %v2445_v17 }
 0x42a   : > { %v2481_v5 = vmax.f32 %v2446_v19, 0.0 }
 0x42c   : > { %2514 = vst.msk [vmem:[%s3761_s25 + $0xf0] sm:$0xff] %vm2483_vm14, %v2481_v5 }
 0x430   : > { %v2397_v45 = vpop.f32.mrf.mxu1 }
 0x431   : > { %v2398_v20 = vadd.f32 %v3750_v43, %v2397_v45 }
 0x432   : > { %v2448_v39 = vpop.f32.mrf.mxu2 }
 0x433   : > { %v2465_v18 = vmax.f32 %v2398_v20, 0.0  ;;  %v2449_v14 = vadd.f32 %v3750_v43, %v2448_v39 }
 0x435   : > { %2498 = vst.msk [vmem:[%s3761_s25 + $0x70] sm:$0xff] %vm2483_vm14, %v2465_v18  ;;  %v2482_v42 = vmax.f32 %v2449_v14, 0.0 }
 0x437   : > { %2515 = vst.msk [vmem:[%s3761_s25 + $0xf8] sm:$0xff] %vm2483_vm14, %v2482_v42 }
 0x43b   : > { %v2400_v21 = vpop.f32.mrf.mxu1 }
 0x43c   : > { %v2401_v46 = vadd.f32 %v3750_v43, %v2400_v21 }
 0x43e   : > { %v2466_v58 = vmax.f32 %v2401_v46, 0.0 }
 0x440   : > { %2499 = vst.msk [vmem:[%s3761_s25 + $0x78] sm:$0xff] %vm2483_vm14, %v2466_v58 }
 0x441 PF: > { %s15_s18 = sadd.s32 1, %s2688_s18  }
 0x442   : > { %p12_p4 = scmp.ge.s32.totalorder %s15_s18, 4  }
 0x444   :  { %14 = sbr.rel (!%p12_p4) target bundleno = 1 (0x1), region = 73 }

</bundles_post_ra>
